<compile_context>
chip_gen: v7x
topology: tpu7x:2x2x1
jax: 0.10.0
libtpu: 0.0.40
codegen_flags: <defaults>
</compile_context>

<pallas_src>
import math

import jax
import jax.numpy as jnp
from jax import lax
from jax.experimental import pallas as pl
from jax.experimental.pallas import tpu as pltpu


# ----------------------------- small helpers ------------------------------

def _round_up(x, m):
    return ((x + m - 1) // m) * m


def _vmem_limit_bytes(tm, k, c_out, has_extra):
    a_bytes = 2 * tm * k * 2                      # bf16 A tiles, double-buffered
    o_bytes = 2 * tm * c_out * 4                  # f32 out tiles, double-buffered
    w_bytes = k * c_out * 2 + c_out * 4           # resident weight + bias
    e_bytes = 2 * tm * c_out * 4 if has_extra else 0
    total = 2 * (a_bytes + o_bytes + w_bytes + e_bytes) + (1 << 20)
    return int(min(max(total, 4 << 20), 32 << 20))


# ----------------------------- Pallas kernels ------------------------------

def _make_kernel(mode):
    def _mm(a_ref, w_ref, b_ref):
        y = jnp.dot(a_ref[...], w_ref[...], preferred_element_type=jnp.float32)
        return y + b_ref[...]

    if mode == "relu":
        def kernel(a_ref, w_ref, b_ref, o_ref):
            o_ref[...] = jnp.maximum(_mm(a_ref, w_ref, b_ref), 0.0)
    elif mode == "skip_relu":
        def kernel(a_ref, w_ref, b_ref, s_ref, o_ref):
            y = jnp.maximum(_mm(a_ref, w_ref, b_ref), 0.0)   # ReLU in Sequential
            o_ref[...] = jnp.maximum(y + s_ref[...], 0.0)    # skip add + ReLU
    elif mode == "residual_tanh":
        def kernel(a_ref, w_ref, b_ref, r_ref, o_ref):
            o_ref[...] = jnp.tanh(_mm(a_ref, w_ref, b_ref) + r_ref[...])
    else:
        raise ValueError(mode)
    return kernel


def _fused_matmul(a, wmat, bias, *, mode, extra=None, tm_cap=256):
    """out = epilogue(a @ wmat + bias [, extra]).  Tiled over rows of `a`."""
    m, k = a.shape
    c_out = wmat.shape[1]
    tm = min(tm_cap, _round_up(m, 8))
    m_pad = _round_up(m, tm)
    if m_pad != m:
        a = jnp.pad(a, ((0, m_pad - m), (0, 0)))
        if extra is not None:
            extra = jnp.pad(extra, ((0, m_pad - m), (0, 0)))

    a_bf = a.astype(jnp.bfloat16)
    w_bf = wmat.astype(jnp.bfloat16)
    b2 = bias.reshape(1, c_out).astype(jnp.float32)

    in_specs = [
        pl.BlockSpec((tm, k), lambda i: (i, 0)),       # A tile (pipelined)
        pl.BlockSpec((k, c_out), lambda i: (0, 0)),    # weight (resident)
        pl.BlockSpec((1, c_out), lambda i: (0, 0)),    # bias (resident)
    ]
    args = [a_bf, w_bf, b2]
    if extra is not None:
        in_specs.append(pl.BlockSpec((tm, c_out), lambda i: (i, 0)))
        args.append(extra.astype(jnp.float32))

    out = pl.pallas_call(
        _make_kernel(mode),
        out_shape=jax.ShapeDtypeStruct((m_pad, c_out), jnp.float32),
        grid=(m_pad // tm,),
        in_specs=in_specs,
        out_specs=pl.BlockSpec((tm, c_out), lambda i: (i, 0)),
        compiler_params=pltpu.CompilerParams(
            dimension_semantics=("parallel",),
            vmem_limit_bytes=_vmem_limit_bytes(tm, k, c_out, extra is not None),
        ),
    )(*args)
    return out[:m]


# ---------------------------- conv lowerings -------------------------------

def _extract_patches(xp, k, stride):
    """xp: padded NHWC (N, Hp, Wp, C) -> A (N*Ho*Wo, k*k*C), K = (kh, kw, c)."""
    n, hp, wp, c = xp.shape
    ho = (hp - k) // stride + 1
    wo = (wp - k) // stride + 1
    cols = []
    for i in range(k):
        for j in range(k):
            cols.append(lax.slice(
                xp, (0, i, j, 0),
                (n, i + (ho - 1) * stride + 1, j + (wo - 1) * stride + 1, c),
                (1, stride, stride, 1)))
    patches = jnp.stack(cols, axis=3)                # (N, Ho, Wo, k*k, C)
    return patches.reshape(n * ho * wo, k * k * c), (n, ho, wo)


def _dilate_hw(x, stride):
    if stride == 1:
        return x
    n, h, w, c = x.shape
    y = jnp.zeros((n, (h - 1) * stride + 1, (w - 1) * stride + 1, c), x.dtype)
    return y.at[:, ::stride, ::stride, :].set(x)


def conv2d_fused(x_nhwc, w, b, *, stride, mode="relu", extra=None):
    """PyTorch Conv2d (weight OIHW, padding=1) + fused epilogue, NHWC in/out."""
    c_out, c_in, k, _ = w.shape
    xp = jnp.pad(x_nhwc, ((0, 0), (1, 1), (1, 1), (0, 0)))
    a, (n, ho, wo) = _extract_patches(xp, k, stride)
    wmat = jnp.transpose(w, (2, 3, 1, 0)).reshape(k * k * c_in, c_out)
    e = None if extra is None else extra.reshape(-1, c_out)
    out = _fused_matmul(a, wmat, b, mode=mode, extra=e)
    return out.reshape(n, ho, wo, c_out)


def conv_transpose2d_fused(x_nhwc, w_t, b, *, stride, output_padding=0,
                           mode="relu", extra=None):
    """PyTorch ConvTranspose2d (weight IOHW, padding=1) as a regular conv on a
    zero-dilated + re-padded input with the flipped, channel-swapped kernel."""
    c_in, c_out, k, _ = w_t.shape
    pad_lo = k - 1 - 1                      # k - 1 - padding
    pad_hi = pad_lo + output_padding
    xd = _dilate_hw(x_nhwc, stride)
    xp = jnp.pad(xd, ((0, 0), (pad_lo, pad_hi), (pad_lo, pad_hi), (0, 0)))
    a, (n, ho, wo) = _extract_patches(xp, k, 1)
    wmat = jnp.transpose(w_t[:, :, ::-1, ::-1], (2, 3, 0, 1)
                         ).reshape(k * k * c_in, c_out)
    e = None if extra is None else extra.reshape(-1, c_out)
    out = _fused_matmul(a, wmat, b, mode=mode, extra=e)
    return out.reshape(n, ho, wo, c_out)


# ----------------------------- model definition ----------------------------

NUM_LAYERS = 5
NUM_FEATURES = 64
INPUT_CHANNELS = 1


def init_params(key, num_layers=NUM_LAYERS, num_features=NUM_FEATURES,
                input_channels=INPUT_CHANNELS):
    keys = jax.random.split(key, 4 * num_layers)
    params = {}
    ki = 0

    def uinit(k_, shape, fan_in):
        bound = 1.0 / math.sqrt(fan_in)
        return jax.random.uniform(k_, shape, jnp.float32, -bound, bound)

    c_in = input_channels
    for i in range(num_layers):                      # encoder: Conv2d OIHW
        fan_in = c_in * 9
        params[f"enc{i}_w"] = uinit(keys[ki], (num_features, c_in, 3, 3), fan_in); ki += 1
        params[f"enc{i}_b"] = uinit(keys[ki], (num_features,), fan_in); ki += 1
        c_in = num_features
    for i in range(num_layers):                      # decoder: ConvTranspose2d IOHW
        c_out = input_channels if i == num_layers - 1 else num_features
        fan_in = c_out * 9
        params[f"dec{i}_w"] = uinit(keys[ki], (num_features, c_out, 3, 3), fan_in); ki += 1
        params[f"dec{i}_b"] = uinit(keys[ki], (c_out,), fan_in); ki += 1
    return params


def dae_forward(params, x_nchw, num_layers=NUM_LAYERS):
    x = jnp.transpose(x_nchw, (0, 2, 3, 1)).astype(jnp.float32)   # NHWC
    residual = x
    conv_feats = []
    max_feats = math.ceil(num_layers / 2) - 1

    h = x
    for i in range(num_layers):
        stride = 2 if i == 0 else 1
        h = conv2d_fused(h, params[f"enc{i}_w"], params[f"enc{i}_b"],
                         stride=stride, mode="relu")
        if (i + 1) % 2 == 0 and len(conv_feats) < max_feats:
            conv_feats.append(h)

    feat_idx = 0
    for i in range(num_layers):
        if i == num_layers - 1:
            # Final stride-2 deconv: fused bias + residual add + tanh epilogue.
            h = conv_transpose2d_fused(h, params[f"dec{i}_w"], params[f"dec{i}_b"],
                                       stride=2, output_padding=1,
                                       mode="residual_tanh", extra=residual)
        else:
            use_skip = ((i + 1 + num_layers) % 2 == 0) and (feat_idx < len(conv_feats))
            skip = conv_feats[-(feat_idx + 1)] if use_skip else None
            if use_skip:
                feat_idx += 1
            h = conv_transpose2d_fused(h, params[f"dec{i}_w"], params[f"dec{i}_b"],
                                       stride=1, output_padding=0,
                                       mode="skip_relu" if use_skip else "relu",
                                       extra=skip)
    return jnp.transpose(h, (0, 3, 1, 2))            # back to NCHW


# ------------------------- pure-JAX reference (check) -----------------------

def _conv2d_ref(x, w, b, stride, pad):
    y = lax.conv_general_dilated(x, w, (stride, stride),
                                 [(pad, pad), (pad, pad)],
                                 dimension_numbers=('NCHW', 'OIHW', 'NCHW'))
    return y + b[None, :, None, None]


def _convT2d_ref(x, w_t, b, stride, pad, output_padding):
    k = w_t.shape[2]
    w_conv = jnp.transpose(w_t[:, :, ::-1, ::-1], (1, 0, 2, 3))
    lo, hi = k - 1 - pad, k - 1 - pad + output_padding
    y = lax.conv_general_dilated(x, w_conv, (1, 1), [(lo, hi), (lo, hi)],
                                 lhs_dilation=(stride, stride),
                                 dimension_numbers=('NCHW', 'OIHW', 'NCHW'))
    return y + b[None, :, None, None]


def dae_forward_reference(params, x, num_layers=NUM_LAYERS):
    residual = x
    conv_feats = []
    max_feats = math.ceil(num_layers / 2) - 1
    h = x
    for i in range(num_layers):
        stride = 2 if i == 0 else 1
        h = jnp.maximum(_conv2d_ref(h, params[f"enc{i}_w"], params[f"enc{i}_b"],
                                    stride, 1), 0.0)
        if (i + 1) % 2 == 0 and len(conv_feats) < max_feats:
            conv_feats.append(h)
    feat_idx = 0
    for i in range(num_layers):
        if i == num_layers - 1:
            h = _convT2d_ref(h, params[f"dec{i}_w"], params[f"dec{i}_b"], 2, 1, 1)
        else:
            h = jnp.maximum(_convT2d_ref(h, params[f"dec{i}_w"],
                                         params[f"dec{i}_b"], 1, 1, 0), 0.0)
            if ((i + 1 + num_layers) % 2 == 0) and (feat_idx < len(conv_feats)):
                h = jnp.maximum(h + conv_feats[-(feat_idx + 1)], 0.0)
                feat_idx += 1
    return jnp.tanh(h + residual)


# ---------------------------------- main -----------------------------------

if __name__ == "__main__":
    key = jax.random.PRNGKey(0)
    k_params, k_x = jax.random.split(key)

    x = jax.random.normal(k_x, (2, INPUT_CHANNELS, 16, 16), jnp.float32)
    params = init_params(k_params)

    out = jax.block_until_ready(jax.jit(dae_forward)(params, x))
    assert out.shape == x.shape, out.shape
    assert bool(jnp.all(jnp.isfinite(out)))
    assert bool(jnp.all(jnp.abs(out) <= 1.0))        # tanh output range

    ref = jax.block_until_ready(jax.jit(dae_forward_reference)(params, x))
    max_err = float(jnp.max(jnp.abs(out - ref)))
    assert max_err < 5e-2, f"max abs error vs reference: {max_err}"

    print("KERNEL_OK")
</pallas_src>

<mosaic_0001>
module attributes {stable_mosaic.version = 11 : i64} {
  func.func @kernel(%arg0: i32, %arg1: memref<128x9xbf16, #tpu.memory_space<vmem>>, %arg2: memref<9x64xbf16, #tpu.memory_space<vmem>>, %arg3: memref<1x64xf32, #tpu.memory_space<vmem>>, %arg4: memref<128x64xf32, #tpu.memory_space<vmem>>) attributes {dimension_semantics = [#tpu.dimension_semantics<parallel>], iteration_bounds = array<i64: 1>, scalar_prefetch = 0 : i64, scratch_operands = 0 : i64, tpu.core_type = #tpu.core_type<tc>, window_params = [{transform_indices = @transform_0, window_bounds = array<i64: 128, 9>}, {pipeline_mode = #tpu.pipeline_mode<synchronous>, transform_indices = @transform_1, window_bounds = array<i64: 9, 64>}, {pipeline_mode = #tpu.pipeline_mode<synchronous>, transform_indices = @transform_2, window_bounds = array<i64: 1, 64>}, {transform_indices = @transform_3, window_bounds = array<i64: 128, 64>}]} {
    %c0 = arith.constant 0 : index
    %c0_0 = arith.constant 0 : index
    %0 = vector.load %arg1[%c0, %c0_0] : memref<128x9xbf16, #tpu.memory_space<vmem>>, vector<128x9xbf16>
    %c0_1 = arith.constant 0 : index
    %c0_2 = arith.constant 0 : index
    %1 = vector.load %arg2[%c0_1, %c0_2] : memref<9x64xbf16, #tpu.memory_space<vmem>>, vector<9x64xbf16>
    %cst = arith.constant dense<0.000000e+00> : vector<128x64xf32>
    %2 = tpu.matmul %0, %1, %cst {dimension_numbers = #tpu.dot_dimension_numbers<[1], [0], [0], [1], [0, 0, 1, 1], [], []>} : vector<128x9xbf16>, vector<9x64xbf16>, vector<128x64xf32> -> vector<128x64xf32>
    %c0_3 = arith.constant 0 : index
    %c0_4 = arith.constant 0 : index
    %3 = vector.load %arg3[%c0_3, %c0_4] : memref<1x64xf32, #tpu.memory_space<vmem>>, vector<1x64xf32>
    %4 = vector.broadcast %3 : vector<1x64xf32> to vector<128x64xf32>
    %5 = arith.addf %2, %4 : vector<128x64xf32>
    %cst_5 = arith.constant 0.000000e+00 : f32
    %6 = vector.broadcast %cst_5 : f32 to vector<128x64xf32>
    %7 = arith.maximumf %5, %6 : vector<128x64xf32>
    %c0_6 = arith.constant 0 : index
    %c0_7 = arith.constant 0 : index
    %8 = vector.load %arg4[%c0_6, %c0_7] : memref<128x64xf32, #tpu.memory_space<vmem>>, vector<128x64xf32>
    tpu.vector_store %arg4[%c0_6, %c0_7], %7 {strides = array<i32>} : memref<128x64xf32, #tpu.memory_space<vmem>>, vector<128x64xf32>,
    return
  }
  func.func @transform_0(%arg0: i32) -> (i32, i32) {
    %c0_i32 = arith.constant 0 : i32
    %c0_i32_0 = arith.constant 0 : i32
    return %arg0, %c0_i32 : i32, i32
  }
  func.func @transform_1(%arg0: i32) -> (i32, i32) {
    %c0_i32 = arith.constant 0 : i32
    %c0_i32_0 = arith.constant 0 : i32
    %c0_i32_1 = arith.constant 0 : i32
    return %c0_i32, %c0_i32_0 : i32, i32
  }
  func.func @transform_2(%arg0: i32) -> (i32, i32) {
    %c0_i32 = arith.constant 0 : i32
    %c0_i32_0 = arith.constant 0 : i32
    %c0_i32_1 = arith.constant 0 : i32
    return %c0_i32, %c0_i32_0 : i32, i32
  }
  func.func @transform_3(%arg0: i32) -> (i32, i32) {
    %c0_i32 = arith.constant 0 : i32
    %c0_i32_0 = arith.constant 0 : i32
    return %arg0, %c0_i32 : i32, i32
  }
}

module attributes {stable_mosaic.version = 11 : i64} {
  func.func @kernel(%arg0: i32, %arg1: memref<128x576xbf16, #tpu.memory_space<vmem>>, %arg2: memref<576x64xbf16, #tpu.memory_space<vmem>>, %arg3: memref<1x64xf32, #tpu.memory_space<vmem>>, %arg4: memref<128x64xf32, #tpu.memory_space<vmem>>) attributes {dimension_semantics = [#tpu.dimension_semantics<parallel>], iteration_bounds = array<i64: 1>, scalar_prefetch = 0 : i64, scratch_operands = 0 : i64, tpu.core_type = #tpu.core_type<tc>, window_params = [{transform_indices = @transform_0, window_bounds = array<i64: 128, 576>}, {pipeline_mode = #tpu.pipeline_mode<synchronous>, transform_indices = @transform_1, window_bounds = array<i64: 576, 64>}, {pipeline_mode = #tpu.pipeline_mode<synchronous>, transform_indices = @transform_2, window_bounds = array<i64: 1, 64>}, {transform_indices = @transform_3, window_bounds = array<i64: 128, 64>}]} {
    %c0 = arith.constant 0 : index
    %c0_0 = arith.constant 0 : index
    %0 = vector.load %arg1[%c0, %c0_0] : memref<128x576xbf16, #tpu.memory_space<vmem>>, vector<128x576xbf16>
    %c0_1 = arith.constant 0 : index
    %c0_2 = arith.constant 0 : index
    %1 = vector.load %arg2[%c0_1, %c0_2] : memref<576x64xbf16, #tpu.memory_space<vmem>>, vector<576x64xbf16>
    %cst = arith.constant dense<0.000000e+00> : vector<128x64xf32>
    %2 = tpu.matmul %0, %1, %cst {dimension_numbers = #tpu.dot_dimension_numbers<[1], [0], [0], [1], [0, 0, 1, 1], [], []>} : vector<128x576xbf16>, vector<576x64xbf16>, vector<128x64xf32> -> vector<128x64xf32>
    %c0_3 = arith.constant 0 : index
    %c0_4 = arith.constant 0 : index
    %3 = vector.load %arg3[%c0_3, %c0_4] : memref<1x64xf32, #tpu.memory_space<vmem>>, vector<1x64xf32>
    %4 = vector.broadcast %3 : vector<1x64xf32> to vector<128x64xf32>
    %5 = arith.addf %2, %4 : vector<128x64xf32>
    %cst_5 = arith.constant 0.000000e+00 : f32
    %6 = vector.broadcast %cst_5 : f32 to vector<128x64xf32>
    %7 = arith.maximumf %5, %6 : vector<128x64xf32>
    %c0_6 = arith.constant 0 : index
    %c0_7 = arith.constant 0 : index
    %8 = vector.load %arg4[%c0_6, %c0_7] : memref<128x64xf32, #tpu.memory_space<vmem>>, vector<128x64xf32>
    tpu.vector_store %arg4[%c0_6, %c0_7], %7 {strides = array<i32>} : memref<128x64xf32, #tpu.memory_space<vmem>>, vector<128x64xf32>,
    return
  }
  func.func @transform_0(%arg0: i32) -> (i32, i32) {
    %c0_i32 = arith.constant 0 : i32
    %c0_i32_0 = arith.constant 0 : i32
    return %arg0, %c0_i32 : i32, i32
  }
  func.func @transform_1(%arg0: i32) -> (i32, i32) {
    %c0_i32 = arith.constant 0 : i32
    %c0_i32_0 = arith.constant 0 : i32
    %c0_i32_1 = arith.constant 0 : i32
    return %c0_i32, %c0_i32_0 : i32, i32
  }
  func.func @transform_2(%arg0: i32) -> (i32, i32) {
    %c0_i32 = arith.constant 0 : i32
    %c0_i32_0 = arith.constant 0 : i32
    %c0_i32_1 = arith.constant 0 : i32
    return %c0_i32, %c0_i32_0 : i32, i32
  }
  func.func @transform_3(%arg0: i32) -> (i32, i32) {
    %c0_i32 = arith.constant 0 : i32
    %c0_i32_0 = arith.constant 0 : i32
    return %arg0, %c0_i32 : i32, i32
  }
}

module attributes {stable_mosaic.version = 11 : i64} {
  func.func @kernel(%arg0: i32, %arg1: memref<128x576xbf16, #tpu.memory_space<vmem>>, %arg2: memref<576x64xbf16, #tpu.memory_space<vmem>>, %arg3: memref<1x64xf32, #tpu.memory_space<vmem>>, %arg4: memref<128x64xf32, #tpu.memory_space<vmem>>, %arg5: memref<128x64xf32, #tpu.memory_space<vmem>>) attributes {dimension_semantics = [#tpu.dimension_semantics<parallel>], iteration_bounds = array<i64: 1>, scalar_prefetch = 0 : i64, scratch_operands = 0 : i64, tpu.core_type = #tpu.core_type<tc>, window_params = [{transform_indices = @transform_0, window_bounds = array<i64: 128, 576>}, {pipeline_mode = #tpu.pipeline_mode<synchronous>, transform_indices = @transform_1, window_bounds = array<i64: 576, 64>}, {pipeline_mode = #tpu.pipeline_mode<synchronous>, transform_indices = @transform_2, window_bounds = array<i64: 1, 64>}, {transform_indices = @transform_3, window_bounds = array<i64: 128, 64>}, {transform_indices = @transform_4, window_bounds = array<i64: 128, 64>}]} {
    %c0 = arith.constant 0 : index
    %c0_0 = arith.constant 0 : index
    %0 = vector.load %arg1[%c0, %c0_0] : memref<128x576xbf16, #tpu.memory_space<vmem>>, vector<128x576xbf16>
    %c0_1 = arith.constant 0 : index
    %c0_2 = arith.constant 0 : index
    %1 = vector.load %arg2[%c0_1, %c0_2] : memref<576x64xbf16, #tpu.memory_space<vmem>>, vector<576x64xbf16>
    %cst = arith.constant dense<0.000000e+00> : vector<128x64xf32>
    %2 = tpu.matmul %0, %1, %cst {dimension_numbers = #tpu.dot_dimension_numbers<[1], [0], [0], [1], [0, 0, 1, 1], [], []>} : vector<128x576xbf16>, vector<576x64xbf16>, vector<128x64xf32> -> vector<128x64xf32>
    %c0_3 = arith.constant 0 : index
    %c0_4 = arith.constant 0 : index
    %3 = vector.load %arg3[%c0_3, %c0_4] : memref<1x64xf32, #tpu.memory_space<vmem>>, vector<1x64xf32>
    %4 = vector.broadcast %3 : vector<1x64xf32> to vector<128x64xf32>
    %5 = arith.addf %2, %4 : vector<128x64xf32>
    %cst_5 = arith.constant 0.000000e+00 : f32
    %6 = vector.broadcast %cst_5 : f32 to vector<128x64xf32>
    %7 = arith.maximumf %5, %6 : vector<128x64xf32>
    %c0_6 = arith.constant 0 : index
    %c0_7 = arith.constant 0 : index
    %8 = vector.load %arg4[%c0_6, %c0_7] : memref<128x64xf32, #tpu.memory_space<vmem>>, vector<128x64xf32>
    %9 = arith.addf %7, %8 : vector<128x64xf32>
    %cst_8 = arith.constant 0.000000e+00 : f32
    %10 = vector.broadcast %cst_8 : f32 to vector<128x64xf32>
    %11 = arith.maximumf %9, %10 : vector<128x64xf32>
    %c0_9 = arith.constant 0 : index
    %c0_10 = arith.constant 0 : index
    %12 = vector.load %arg5[%c0_9, %c0_10] : memref<128x64xf32, #tpu.memory_space<vmem>>, vector<128x64xf32>
    tpu.vector_store %arg5[%c0_9, %c0_10], %11 {strides = array<i32>} : memref<128x64xf32, #tpu.memory_space<vmem>>, vector<128x64xf32>,
    return
  }
  func.func @transform_0(%arg0: i32) -> (i32, i32) {
    %c0_i32 = arith.constant 0 : i32
    %c0_i32_0 = arith.constant 0 : i32
    return %arg0, %c0_i32 : i32, i32
  }
  func.func @transform_1(%arg0: i32) -> (i32, i32) {
    %c0_i32 = arith.constant 0 : i32
    %c0_i32_0 = arith.constant 0 : i32
    %c0_i32_1 = arith.constant 0 : i32
    return %c0_i32, %c0_i32_0 : i32, i32
  }
  func.func @transform_2(%arg0: i32) -> (i32, i32) {
    %c0_i32 = arith.constant 0 : i32
    %c0_i32_0 = arith.constant 0 : i32
    %c0_i32_1 = arith.constant 0 : i32
    return %c0_i32, %c0_i32_0 : i32, i32
  }
  func.func @transform_3(%arg0: i32) -> (i32, i32) {
    %c0_i32 = arith.constant 0 : i32
    %c0_i32_0 = arith.constant 0 : i32
    return %arg0, %c0_i32 : i32, i32
  }
  func.func @transform_4(%arg0: i32) -> (i32, i32) {
    %c0_i32 = arith.constant 0 : i32
    %c0_i32_0 = arith.constant 0 : i32
    return %arg0, %c0_i32 : i32, i32
  }
}

module attributes {stable_mosaic.version = 11 : i64} {
  func.func @kernel(%arg0: i32, %arg1: memref<256x576xbf16, #tpu.memory_space<vmem>>, %arg2: memref<576x1xbf16, #tpu.memory_space<vmem>>, %arg3: memref<1x1xf32, #tpu.memory_space<vmem>>, %arg4: memref<256x1xf32, #tpu.memory_space<vmem>>, %arg5: memref<256x1xf32, #tpu.memory_space<vmem>>) attributes {dimension_semantics = [#tpu.dimension_semantics<parallel>], iteration_bounds = array<i64: 2>, scalar_prefetch = 0 : i64, scratch_operands = 0 : i64, tpu.core_type = #tpu.core_type<tc>, window_params = [{transform_indices = @transform_0, window_bounds = array<i64: 256, 576>}, {pipeline_mode = #tpu.pipeline_mode<synchronous>, transform_indices = @transform_1, window_bounds = array<i64: 576, 1>}, {pipeline_mode = #tpu.pipeline_mode<synchronous>, transform_indices = @transform_2, window_bounds = array<i64: 1, 1>}, {transform_indices = @transform_3, window_bounds = array<i64: 256, 1>}, {transform_indices = @transform_4, window_bounds = array<i64: 256, 1>}]} {
    %c0 = arith.constant 0 : index
    %c0_0 = arith.constant 0 : index
    %0 = vector.load %arg1[%c0, %c0_0] : memref<256x576xbf16, #tpu.memory_space<vmem>>, vector<256x576xbf16>
    %c0_1 = arith.constant 0 : index
    %c0_2 = arith.constant 0 : index
    %1 = vector.load %arg2[%c0_1, %c0_2] : memref<576x1xbf16, #tpu.memory_space<vmem>>, vector<576x1xbf16>
    %cst = arith.constant dense<0.000000e+00> : vector<256x1xf32>
    %2 = tpu.matmul %0, %1, %cst {dimension_numbers = #tpu.dot_dimension_numbers<[1], [0], [0], [1], [0, 0, 1, 1], [], []>} : vector<256x576xbf16>, vector<576x1xbf16>, vector<256x1xf32> -> vector<256x1xf32>
    %c0_3 = arith.constant 0 : index
    %c0_4 = arith.constant 0 : index
    %3 = vector.load %arg3[%c0_3, %c0_4] : memref<1x1xf32, #tpu.memory_space<vmem>>, vector<1x1xf32>
    %4 = vector.broadcast %3 : vector<1x1xf32> to vector<256x1xf32>
    %5 = arith.addf %2, %4 : vector<256x1xf32>
    %c0_5 = arith.constant 0 : index
    %c0_6 = arith.constant 0 : index
    %6 = vector.load %arg4[%c0_5, %c0_6] : memref<256x1xf32, #tpu.memory_space<vmem>>, vector<256x1xf32>
    %7 = arith.addf %5, %6 : vector<256x1xf32>
    %8 = math.tanh %7 : vector<256x1xf32>
    %c0_7 = arith.constant 0 : index
    %c0_8 = arith.constant 0 : index
    %9 = vector.load %arg5[%c0_7, %c0_8] : memref<256x1xf32, #tpu.memory_space<vmem>>, vector<256x1xf32>
    tpu.vector_store %arg5[%c0_7, %c0_8], %8 {strides = array<i32>} : memref<256x1xf32, #tpu.memory_space<vmem>>, vector<256x1xf32>,
    return
  }
  func.func @transform_0(%arg0: i32) -> (i32, i32) {
    %c0_i32 = arith.constant 0 : i32
    %c0_i32_0 = arith.constant 0 : i32
    return %arg0, %c0_i32 : i32, i32
  }
  func.func @transform_1(%arg0: i32) -> (i32, i32) {
    %c0_i32 = arith.constant 0 : i32
    %c0_i32_0 = arith.constant 0 : i32
    %c0_i32_1 = arith.constant 0 : i32
    return %c0_i32, %c0_i32_0 : i32, i32
  }
  func.func @transform_2(%arg0: i32) -> (i32, i32) {
    %c0_i32 = arith.constant 0 : i32
    %c0_i32_0 = arith.constant 0 : i32
    %c0_i32_1 = arith.constant 0 : i32
    return %c0_i32, %c0_i32_0 : i32, i32
  }
  func.func @transform_3(%arg0: i32) -> (i32, i32) {
    %c0_i32 = arith.constant 0 : i32
    %c0_i32_0 = arith.constant 0 : i32
    return %arg0, %c0_i32 : i32, i32
  }
  func.func @transform_4(%arg0: i32) -> (i32, i32) {
    %c0_i32 = arith.constant 0 : i32
    %c0_i32_0 = arith.constant 0 : i32
    return %arg0, %c0_i32 : i32, i32
  }
}

</mosaic_0001>

<bundles_post_ra>
// kernel: dae_forward.10
= control target key start
LH: loop header
LB: loop body
LE: loop exit
PB: predicated region body
PF: predicated region fallthrough
CT: control target
= control target key end

     0   :  { %8 = vsyncpa [#allocation3], 0  ;;  %s346_s12 = smov [#allocation2]   ;;  %s479_s0 = inlined_call_operand.vmem [shape: bf16[128,9], index: 0, kind: input, shape index: {}]   ;;  %s480_s1 = inlined_call_operand.vmem [shape: bf16[9,64], index: 1, kind: input, shape index: {}]   ;;  %s481_s2 = inlined_call_operand.hbm [shape: f32[1,64], index: 2, kind: input, shape index: {}]   ;;  %s482_s3 = inlined_call_operand.vmem [shape: f32[128,64], index: 3, kind: output, shape index: {}]  }
   0x1   :  { %s19_s13 = sshll.u32 %s346_s12, 4  ;;  %s322_s16 = scalar_lea.hbm %s481_s2, 16  ;;  %s20_s13 = int_to_ptr.vmem [resolvable:$true] %s19_s13 }
   0x2   :  { %p323_p0 = scmp.ne.s32.totalorder %s481_s2, %s322_s16  ;;  %p326_p1 = scmp.lt.u32.totalorder %s322_s16, %s481_s2 }
   0x4   :  { %p328_p2 = pnand %p326_p1, %p323_p0 }
   0x6   :  { %331 = shalt.err (!%p328_p2)
}
   0x7   :  { %s332_s21 = scalar_lea.vmem %s20_s13, 16  ;;  %s336_s22 = scalar_lea.vmem %s20_s13, 32 }
   0x8   :  { %p333_p3 = scmp.ne.s32.totalorder %s20_s13, %s332_s21  ;;  %p337_p4 = scmp.lt.s32.totalorder %s20_s13, %s20_s13 }
   0x9   :  { %p338_p5 = scmp.lt.s32.totalorder %s336_s22, %s332_s21 }
   0xb   :  { %p339_p6 = por %p338_p5, %p337_p4 }
   0xd   :  { %p340_p7 = pnand %p339_p6, %p333_p3 }
   0xf   :  { %343 = shalt.err (!%p340_p7)
}
  0x10   :  { %22 = dma.hbm_to_vmem [thread:$0]  %s481_s2, 16, %s20_s13, [#allocation3]  }
  0x11   :  { %344 = dma.done.wait [#allocation3], 16  }
  0x12   :  { %345 = vsyncadd [#allocation3], 4294967280  ;;  %vm122_vm0 = vcmask 1043456   ;;  %vm123_vm1 = vcmask 1044480   ;;  %v347_v0 = vmov 65535   ;;  %vm97_vm2 = vcmask 72704  }
  0x13   :  { %v124_v1 = vsel %vm122_vm0, 4294967295, %v347_v0  ;;  %v313_v3 = vld [vmem:[%s480_s1] sm:$0x1f]   ;;  %v316_v7 = vld [vmem:[%s479_s0 + $0x8] sm:$0xff]   ;;  %v318_v9 = vld [vmem:[%s479_s0 + $0x10] sm:$0xff]   ;;  %vm242_vm3 = vcmask 523264  }
  0x14   :  { %v125_v2 = vsel %vm123_vm1, %v124_v1, 0  ;;  %v314_v4 = vld [vmem:[%s479_s0] sm:$0xff]   ;;  %v317_v8 = vld [vmem:[%s479_s0 + $0x28] sm:$0xff]   ;;  %v319_v10 = vld [vmem:[%s479_s0 + $0x30] sm:$0xff]  }
  0x15   :  { %v127_v5 = vand.u32 %v313_v3, %v125_v2  ;;  %v315_v6 = vld [vmem:[%s479_s0 + $0x20] sm:$0xff]   ;;  %293 = vmatprep.mubr.msk.bf16.mxu0 %vm97_vm2, %v314_v4  ;;  %v320_v11 = vld [vmem:[%s479_s0 + $0x18] sm:$0xff]  }
  0x16   :  { %301 = vmatprep.mubr.msk.bf16.mxu1 %vm97_vm2, %v315_v6  ;;  %v321_v12 = vld [vmem:[%s479_s0 + $0x38] sm:$0xff]   ;;  %v264_v13 = vld [vmem:[#allocation2] ss:$0 sm:$0xff] }
  0x17   :  { %291 = vmatprep.subr.bf16.mxu0 %v127_v5  ;;  %309 = vmatprep.subr.bf16.mxu1 %v127_v5 }
  0x18   :  { %292 = vmatpush3.bf16.msra.mxu0 %v127_v5  ;;  %310 = vmatpush3.bf16.msra.mxu1 %v127_v5 }
  0x1b   :  { %294 = vmatmul.mubr.msk.bf16.vlgmr.msra.gmra.mrb[0].mxu0 %vm97_vm2, %v316_v7  ;;  %302 = vmatmul.mubr.msk.bf16.vlgmr.msra.gmra.mrb[0].mxu1 %vm97_vm2, %v317_v8 }
  0x1c   :  { %297 = vmatprep.mubr.msk.bf16.mxu0 %vm97_vm2, %v318_v9  ;;  %305 = vmatprep.mubr.msk.bf16.mxu1 %vm97_vm2, %v319_v10 }
  0x23   :  { %298 = vmatmul.mubr.msk.bf16.gmra.mrb[4].mxu0 %vm97_vm2, %v320_v11  ;;  %306 = vmatmul.mubr.msk.bf16.gmra.mrb[4].mxu1 %vm97_vm2, %v321_v12 }
  0xee   :  { %v295_v14 = vpop.f32.mrb[0].mxu0  ;;  %v303_v15 = vpop.f32.mrb[0].mxu1 }
  0xef   :  { %v172_v16 = vadd.f32 %v295_v14, %v264_v13  ;;  %v204_v17 = vadd.f32 %v303_v15, %v264_v13  ;;  %v163_v18 = vpop.f32.mrb[1].mxu0  ;;  %v195_v19 = vpop.f32.mrb[1].mxu1 }
  0xf0   :  { %v164_v20 = vadd.f32 %v264_v13, %v163_v18  ;;  %v196_v21 = vadd.f32 %v264_v13, %v195_v19  ;;  %v296_v22 = vpop.f32.mrb[2].mxu0  ;;  %v304_v23 = vpop.f32.mrb[2].mxu1 }
  0xf1   :  { %v228_v24 = vmax.f32 %v172_v16, 0.0  ;;  %v236_v25 = vmax.f32 %v204_v17, 0.0  ;;  %v175_v26 = vadd.f32 %v296_v22, %v264_v13  ;;  %v207_v27 = vadd.f32 %v304_v23, %v264_v13  ;;  %v166_v28 = vpop.f32.mrb[3].mxu0  ;;  %v198_v29 = vpop.f32.mrb[3].mxu1 }
  0xf2   :  { %v226_v30 = vmax.f32 %v164_v20, 0.0  ;;  %v234_v31 = vmax.f32 %v196_v21, 0.0  ;;  %v167_v32 = vadd.f32 %v264_v13, %v166_v28  ;;  %v199_v33 = vadd.f32 %v264_v13, %v198_v29 }
  0xf3   :  { %245 = vst.msk [vmem:[%s482_s3 + $0x10] sm:$0xff] %vm242_vm3, %v228_v24  ;;  %253 = vst.msk [vmem:[%s482_s3 + $0x50] sm:$0xff] %vm242_vm3, %v236_v25  ;;  %v229_v34 = vmax.f32 %v175_v26, 0.0  ;;  %v237_v35 = vmax.f32 %v207_v27, 0.0 }
  0xf4   :  { %243 = vst.msk [vmem:[%s482_s3] sm:$0xff] %vm242_vm3, %v226_v30  ;;  %251 = vst.msk [vmem:[%s482_s3 + $0x40] sm:$0xff] %vm242_vm3, %v234_v31  ;;  %v227_v36 = vmax.f32 %v167_v32, 0.0  ;;  %v235_v37 = vmax.f32 %v199_v33, 0.0 }
  0xf5   :  { %246 = vst.msk [vmem:[%s482_s3 + $0x18] sm:$0xff] %vm242_vm3, %v229_v34  ;;  %254 = vst.msk [vmem:[%s482_s3 + $0x58] sm:$0xff] %vm242_vm3, %v237_v35 }
  0xf6   :  { %244 = vst.msk [vmem:[%s482_s3 + $0x8] sm:$0xff] %vm242_vm3, %v227_v36  ;;  %252 = vst.msk [vmem:[%s482_s3 + $0x48] sm:$0xff] %vm242_vm3, %v235_v37  ;;  %v299_v38 = vpop.f32.mrb[4].mxu0  ;;  %v307_v39 = vpop.f32.mrb[4].mxu1 }
  0xf7   :  { %v188_v40 = vadd.f32 %v299_v38, %v264_v13  ;;  %v220_v41 = vadd.f32 %v307_v39, %v264_v13  ;;  %v179_v42 = vpop.f32.mrb[5].mxu0  ;;  %v211_v43 = vpop.f32.mrb[5].mxu1 }
  0xf8   :  { %v180_v44 = vadd.f32 %v264_v13, %v179_v42  ;;  %v212_v45 = vadd.f32 %v264_v13, %v211_v43  ;;  %v300_v46 = vpop.f32.mrb[6].mxu0  ;;  %v308_v47 = vpop.f32.mrb[6].mxu1 }
  0xf9   :  { %v232_v48 = vmax.f32 %v188_v40, 0.0  ;;  %v240_v49 = vmax.f32 %v220_v41, 0.0  ;;  %v191_v50 = vadd.f32 %v300_v46, %v264_v13  ;;  %v223_v51 = vadd.f32 %v308_v47, %v264_v13  ;;  %v182_v52 = vpop.f32.mrb[7].mxu0  ;;  %v214_v53 = vpop.f32.mrb[7].mxu1 }
  0xfa   :  { %v230_v54 = vmax.f32 %v180_v44, 0.0  ;;  %v238_v55 = vmax.f32 %v212_v45, 0.0  ;;  %v183_v56 = vadd.f32 %v264_v13, %v182_v52  ;;  %v215_v57 = vadd.f32 %v264_v13, %v214_v53 }
  0xfb   :  { %249 = vst.msk [vmem:[%s482_s3 + $0x30] sm:$0xff] %vm242_vm3, %v232_v48  ;;  %257 = vst.msk [vmem:[%s482_s3 + $0x70] sm:$0xff] %vm242_vm3, %v240_v49  ;;  %v233_v58 = vmax.f32 %v191_v50, 0.0  ;;  %v241_v59 = vmax.f32 %v223_v51, 0.0 }
  0xfc   :  { %247 = vst.msk [vmem:[%s482_s3 + $0x20] sm:$0xff] %vm242_vm3, %v230_v54  ;;  %255 = vst.msk [vmem:[%s482_s3 + $0x60] sm:$0xff] %vm242_vm3, %v238_v55  ;;  %v231_v60 = vmax.f32 %v183_v56, 0.0  ;;  %v239_v61 = vmax.f32 %v215_v57, 0.0 }
  0xfd   :  { %250 = vst.msk [vmem:[%s482_s3 + $0x38] sm:$0xff] %vm242_vm3, %v233_v58  ;;  %258 = vst.msk [vmem:[%s482_s3 + $0x78] sm:$0xff] %vm242_vm3, %v241_v59 }
  0xfe   :  { %248 = vst.msk [vmem:[%s482_s3 + $0x28] sm:$0xff] %vm242_vm3, %v231_v60  ;;  %256 = vst.msk [vmem:[%s482_s3 + $0x68] sm:$0xff] %vm242_vm3, %v239_v61 }
  0xff   :  { %263 = vsyncpa [#allocation3], 1 }

// kernel: dae_forward.11
= control target key start
LH: loop header
LB: loop body
LE: loop exit
PB: predicated region body
PF: predicated region fallthrough
CT: control target
= control target key end

     0   :  { %vm558_vm0 = vcmask 523264   ;;  %s1630_s1 = inlined_call_operand.vmem [shape: bf16[576,64], index: 1, kind: input, shape index: {}]   ;;  %s1631_s0 = inlined_call_operand.vmem [shape: bf16[128,576], index: 0, kind: input, shape index: {}]   ;;  %s1632_s2 = inlined_call_operand.vmem [shape: f32[1,64], index: 2, kind: input, shape index: {}]   ;;  %s1633_s3 = inlined_call_operand.vmem [shape: f32[128,64], index: 3, kind: output, shape index: {}]  }
   0x1   :  { %v1167_v0 = vld [vmem:[%s1630_s1 + $0x40] sm:$0xff]   ;;  %v1171_v4 = vld [vmem:[%s1630_s1 + $0x48] sm:$0xff]   ;;  %v1175_v8 = vld [vmem:[%s1630_s1 + $0x50] sm:$0xff]  }
   0x2   :  { %v1168_v1 = vld [vmem:[%s1630_s1 + $0xc0] sm:$0xff]   ;;  %995 = vmatprep.subr.bf16.mxu0 %v1167_v0  ;;  %v1172_v5 = vld [vmem:[%s1630_s1 + $0xc8] sm:$0xff]   ;;  %v1176_v9 = vld [vmem:[%s1630_s1 + $0xd0] sm:$0xff]  }
   0x3   :  { %v1169_v2 = vld [vmem:[%s1630_s1] sm:$0xff]   ;;  %1059 = vmatprep.subr.bf16.mxu1 %v1168_v1  ;;  %v1173_v6 = vld [vmem:[%s1630_s1 + $0x8] sm:$0xff]   ;;  %v1177_v10 = vld [vmem:[%s1630_s1 + $0x10] sm:$0xff]  }
   0x4   :  { %v1170_v3 = vld [vmem:[%s1630_s1 + $0x80] sm:$0xff]   ;;  %996 = vmatpush3.bf16.msra.mxu0 %v1169_v2  ;;  %v1174_v7 = vld [vmem:[%s1630_s1 + $0x88] sm:$0xff]   ;;  %v1178_v11 = vld [vmem:[%s1630_s1 + $0x90] sm:$0xff]  }
   0x5   :  { %1060 = vmatpush3.bf16.msra.mxu1 %v1170_v3  ;;  %997 = vmatprep.subr.bf16.mxu0 %v1171_v4  ;;  %v1179_v12 = vld [vmem:[%s1630_s1 + $0x58] sm:$0xff]   ;;  %v1183_v16 = vld [vmem:[%s1630_s1 + $0x60] sm:$0xff]   ;;  %v1187_v20 = vld [vmem:[%s1630_s1 + $0x68] sm:$0xff]  }
   0x6   :  { %1061 = vmatprep.subr.bf16.mxu1 %v1172_v5  ;;  %v1180_v13 = vld [vmem:[%s1630_s1 + $0xd8] sm:$0xff]   ;;  %v1184_v17 = vld [vmem:[%s1630_s1 + $0xe0] sm:$0xff]   ;;  %v1188_v21 = vld [vmem:[%s1630_s1 + $0xe8] sm:$0xff]  }
   0x7   :  { %v1181_v14 = vld [vmem:[%s1630_s1 + $0x18] sm:$0xff]   ;;  %v1185_v18 = vld [vmem:[%s1630_s1 + $0x20] sm:$0xff]   ;;  %v1189_v22 = vld [vmem:[%s1630_s1 + $0x28] sm:$0xff]  }
   0x8   :  { %998 = vmatpush3.bf16.msra.mxu0 %v1173_v6  ;;  %v1182_v15 = vld [vmem:[%s1630_s1 + $0x98] sm:$0xff]   ;;  %v1186_v19 = vld [vmem:[%s1630_s1 + $0xa0] sm:$0xff]   ;;  %v1190_v23 = vld [vmem:[%s1630_s1 + $0xa8] sm:$0xff]  }
   0x9   :  { %1062 = vmatpush3.bf16.msra.mxu1 %v1174_v7  ;;  %999 = vmatprep.subr.bf16.mxu0 %v1175_v8  ;;  %v1191_v24 = vld [vmem:[%s1630_s1 + $0x70] sm:$0xff]   ;;  %v1195_v28 = vld [vmem:[%s1630_s1 + $0x78] sm:$0xff]   ;;  %v1204_v35 = vld [vmem:[%s1631_s0 + $0xc] ss:$20 sps:$4 sm:$0xff]  }
   0xa   :  { %1063 = vmatprep.subr.bf16.mxu1 %v1176_v9  ;;  %v1192_v25 = vld [vmem:[%s1630_s1 + $0xf0] sm:$0xff]   ;;  %v1196_v29 = vld [vmem:[%s1630_s1 + $0xf8] sm:$0xff]   ;;  %v1205_v36 = vld [vmem:[%s1630_s1 + $0x100] sm:$0xff]   ;;  %712 = vmatprep.mubr.bf16.mxu1 %v1204_v35 }
   0xb   :  { %v1193_v26 = vld [vmem:[%s1630_s1 + $0x30] sm:$0xff]   ;;  %v1197_v30 = vld [vmem:[%s1630_s1 + $0x38] sm:$0xff]   ;;  %v1206_v37 = vld [vmem:[%s1631_s0 + $0x2c] ss:$20 sps:$4 sm:$0xff]  }
   0xc   :  { %1000 = vmatpush3.bf16.msra.mxu0 %v1177_v10  ;;  %v1194_v27 = vld [vmem:[%s1630_s1 + $0xb0] sm:$0xff]   ;;  %v1198_v31 = vld [vmem:[%s1630_s1 + $0xb8] sm:$0xff]   ;;  %v1218_v42 = vld [vmem:[%s1630_s1 + $0x108] sm:$0xff]  }
   0xd   :  { %1064 = vmatpush3.bf16.msra.mxu1 %v1178_v11  ;;  %1001 = vmatprep.subr.bf16.mxu0 %v1179_v12  ;;  %v1199_v32 = vld [vmem:[%s1631_s0] ss:$20 sps:$4 sm:$0xff]   ;;  %v1201_v33 = vld [vmem:[%s1631_s0 + $0x4] ss:$20 sps:$4 sm:$0xff]   ;;  %v1202_v34 = vld [vmem:[%s1631_s0 + $0x8] ss:$20 sps:$4 sm:$0xff]  }
   0xe   :  { %1065 = vmatprep.subr.bf16.mxu1 %v1180_v13  ;;  %615 = vmatprep.mubr.bf16.mxu0 %v1201_v33  ;;  %v1208_v38 = vld [vmem:[%s1631_s0 + $0x34] ss:$20 sps:$4 sm:$0xff]   ;;  %v1211_v40 = vld [vmem:[%s1631_s0 + $0x30] ss:$20 sps:$4 sm:$0xff]   ;;  %v1217_v45 = vld [vmem:[%s1631_s0 + $0x58] ss:$20 sps:$4 sm:$0xff]  }
   0xf   :  { %v1210_v39 = vld [vmem:[%s1631_s0 + $0x28] ss:$20 sps:$4 sm:$0xff]   ;;  %v1216_v44 = vld [vmem:[%s1631_s0 + $0x50] ss:$20 sps:$4 sm:$0xff]   ;;  %v1223_v50 = vld [vmem:[%s1631_s0 + $0x78] ss:$20 sps:$4 sm:$0xff]  }
  0x10   :  { %1002 = vmatpush3.bf16.msra.mxu0 %v1181_v14  ;;  %v1212_v41 = vld [vmem:[%s1631_s0 + $0x54] ss:$20 sps:$4 sm:$0xff]   ;;  %v1214_v43 = vld [vmem:[%s1631_s0 + $0x5c] ss:$20 sps:$4 sm:$0xff]   ;;  %v1221_v48 = vld [vmem:[%s1631_s0 + $0x84] ss:$20 sps:$4 sm:$0xff]  }
  0x11   :  { %1066 = vmatpush3.bf16.msra.mxu1 %v1182_v15  ;;  %1003 = vmatprep.subr.bf16.mxu0 %v1183_v16  ;;  %v1231_v46 = vld [vmem:[%s1630_s1 + $0x110] sm:$0xff]   ;;  %v1244_v49 = vld [vmem:[%s1630_s1 + $0x118] sm:$0xff]   ;;  %v1227_v53 = vld [vmem:[%s1631_s0 + $0xac] ss:$20 sps:$4 sm:$0xff]  }
  0x12   :  { %1067 = vmatprep.subr.bf16.mxu1 %v1184_v17  ;;  %v1219_v47 = vld [vmem:[%s1631_s0 + $0x7c] ss:$20 sps:$4 sm:$0xff]   ;;  %v1224_v51 = vld [vmem:[%s1631_s0 + $0x80] ss:$20 sps:$4 sm:$0xff]   ;;  %v1225_v52 = vld [vmem:[%s1631_s0 + $0xa4] ss:$20 sps:$4 sm:$0xff]  }
  0x13   :  { %v1229_v54 = vld [vmem:[%s1631_s0 + $0xa0] ss:$20 sps:$4 sm:$0xff]   ;;  %v1230_v55 = vld [vmem:[%s1631_s0 + $0xa8] ss:$20 sps:$4 sm:$0xff]   ;;  %v1237_v59 = vld [vmem:[%s1631_s0 + $0xd0] ss:$20 sps:$4 sm:$0xff]  }
  0x14   :  { %1004 = vmatpush3.bf16.msra.mxu0 %v1185_v18  ;;  %v1232_v56 = vld [vmem:[%s1631_s0 + $0xcc] ss:$20 sps:$4 sm:$0xff]   ;;  %v1234_v57 = vld [vmem:[%s1631_s0 + $0xd4] ss:$20 sps:$4 sm:$0xff]   ;;  %v1240_v61 = vld [vmem:[%s1631_s0 + $0xfc] ss:$20 sps:$4 sm:$0xff]  }
  0x15   :  { %1068 = vmatpush3.bf16.msra.mxu1 %v1186_v19  ;;  %1005 = vmatprep.subr.bf16.mxu0 %v1187_v20  ;;  %v1236_v58 = vld [vmem:[%s1631_s0 + $0xc8] ss:$20 sps:$4 sm:$0xff]   ;;  %v1242_v62 = vld [vmem:[%s1631_s0 + $0xf0] ss:$20 sps:$4 sm:$0xff]   ;;  %v1243_v63 = vld [vmem:[%s1631_s0 + $0xf8] ss:$20 sps:$4 sm:$0xff]  }
  0x16   :  { %1069 = vmatprep.subr.bf16.mxu1 %v1188_v21  ;;  %v1238_v60 = vld [vmem:[%s1631_s0 + $0xf4] ss:$20 sps:$4 sm:$0xff]   ;;  %v1245_v0 = vld [vmem:[%s1631_s0 + $0x11c] ss:$20 sps:$4 sm:$0xff]   ;;  %v1247_v1 = vld [vmem:[%s1631_s0 + $0x124] ss:$20 sps:$4 sm:$0xff]  }
  0x17   :  { %v1249_v2 = vld [vmem:[%s1631_s0 + $0x118] ss:$20 sps:$4 sm:$0xff]   ;;  %v1250_v3 = vld [vmem:[%s1631_s0 + $0x120] ss:$20 sps:$4 sm:$0xff]   ;;  %v1251_v4 = vld [vmem:[%s1631_s0 + $0x10] ss:$20 sps:$4 sm:$0xff]  }
  0x18   :  { %1006 = vmatpush3.bf16.msra.mxu0 %v1189_v22  ;;  %v1252_v5 = vld [vmem:[%s1631_s0 + $0xb0] ss:$20 sps:$4 sm:$0xff]   ;;  %v1253_v6 = vld [vmem:[%s1631_s0 + $0x38] ss:$20 sps:$4 sm:$0xff]   ;;  %v1255_v8 = vld [vmem:[%s1631_s0 + $0x60] ss:$20 sps:$4 sm:$0xff]  }
  0x19   :  { %1070 = vmatpush3.bf16.msra.mxu1 %v1190_v23  ;;  %1007 = vmatprep.subr.bf16.mxu0 %v1191_v24  ;;  %v1254_v7 = vld [vmem:[%s1631_s0 + $0xd8] ss:$20 sps:$4 sm:$0xff]   ;;  %v1256_v9 = vld [vmem:[%s1631_s0 + $0x100] ss:$20 sps:$4 sm:$0xff]   ;;  %v1257_v10 = vld [vmem:[%s1631_s0 + $0x88] ss:$20 sps:$4 sm:$0xff]  }
  0x1a   :  { %1071 = vmatprep.subr.bf16.mxu1 %v1192_v25  ;;  %v1258_v11 = vld [vmem:[%s1631_s0 + $0x128] ss:$20 sps:$4 sm:$0xff]   ;;  %v1518_v14 = vld [vmem:[%s1632_s2] ss:$0 sm:$0xff] }
  0x1c   :  { %1008 = vmatpush3.bf16.msra.mxu0 %v1193_v26 }
  0x1d   :  { %1072 = vmatpush3.bf16.msra.mxu1 %v1194_v27  ;;  %1009 = vmatprep.subr.bf16.mxu0 %v1195_v28 }
  0x1e   :  { %1073 = vmatprep.subr.bf16.mxu1 %v1196_v29 }
  0x20   :  { %1010 = vmatpush3.bf16.msra.mxu0 %v1197_v30 }
  0x21   :  { %1074 = vmatpush3.bf16.msra.mxu1 %v1198_v31  ;;  %1135 = vmatprep.subr.bf16.mxu0 %v1205_v36 }
  0x22   :  { %1159 = vmatprep.subr.bf16.mxu1 %v1205_v36 }
  0x23   :  { %616 = vmatmul.mubr.bf16.vlgmr.msra.gmra.mrb[0].mxu0 %v1199_v32 }
  0x24   :  { %713 = vmatmul.mubr.bf16.vlgmr.msra.gmra.mrb[0].mxu1 %v1202_v34  ;;  %1136 = vmatpush3.bf16.msra.mxu0 %v1205_v36 }
  0x25   :  { %1163 = vmatpush3.bf16.msra.mxu1 %v1205_v36  ;;  %623 = vmatprep.mubr.bf16.mxu0 %v1206_v37 }
  0x26   :  { %720 = vmatprep.mubr.bf16.mxu1 %v1208_v38  ;;  %1137 = vmatprep.subr.bf16.mxu0 %v1218_v42 }
  0x27   :  { %1160 = vmatprep.subr.bf16.mxu1 %v1218_v42 }
  0x28   :  { %1138 = vmatpush3.bf16.msra.mxu0 %v1218_v42 }
  0x29   :  { %1164 = vmatpush3.bf16.msra.mxu1 %v1218_v42  ;;  %1139 = vmatprep.subr.bf16.mxu0 %v1231_v46 }
  0x2a   :  { %1161 = vmatprep.subr.bf16.mxu1 %v1231_v46 }
  0x2b   :  { %624 = vmatmul.mubr.bf16.gmra.mrb[4].mxu0 %v1210_v39 }
  0x2c   :  { %721 = vmatmul.mubr.bf16.gmra.mrb[4].mxu1 %v1211_v40  ;;  %631 = vmatprep.mubr.bf16.mxu0 %v1212_v41 }
  0x2d   :  { %728 = vmatprep.mubr.bf16.mxu1 %v1214_v43  ;;  %1140 = vmatpush3.bf16.msra.mxu0 %v1231_v46 }
  0x2e   :  { %1165 = vmatpush3.bf16.msra.mxu1 %v1231_v46  ;;  %1141 = vmatprep.subr.bf16.mxu0 %v1244_v49 }
  0x2f   :  { %1162 = vmatprep.subr.bf16.mxu1 %v1244_v49 }
  0x31   :  { %1142 = vmatpush3.bf16.msra.mxu0 %v1244_v49 }
  0x32   :  { %1166 = vmatpush3.bf16.msra.mxu1 %v1244_v49 }
  0x33   :  { %632 = vmatmul.mubr.bf16.gmra.mrb[8].mxu0 %v1216_v44 }
  0x34   :  { %729 = vmatmul.mubr.bf16.gmra.mrb[8].mxu1 %v1217_v45  ;;  %639 = vmatprep.mubr.bf16.mxu0 %v1219_v47 }
  0x35   :  { %736 = vmatprep.mubr.bf16.mxu1 %v1221_v48 }
  0x3b   :  { %640 = vmatmul.mubr.bf16.gmra.mrb[12].mxu0 %v1223_v50 }
  0x3c   :  { %737 = vmatmul.mubr.bf16.gmra.mrb[12].mxu1 %v1224_v51  ;;  %647 = vmatprep.mubr.bf16.mxu0 %v1225_v52 }
  0x3d   :  { %744 = vmatprep.mubr.bf16.mxu1 %v1227_v53 }
  0x43   :  { %648 = vmatmul.mubr.bf16.gmra.mrb[16].mxu0 %v1229_v54 }
  0x44   :  { %745 = vmatmul.mubr.bf16.gmra.mrb[16].mxu1 %v1230_v55  ;;  %655 = vmatprep.mubr.bf16.mxu0 %v1232_v56 }
  0x45   :  { %752 = vmatprep.mubr.bf16.mxu1 %v1234_v57 }
  0x4b   :  { %656 = vmatmul.mubr.bf16.gmra.mrb[20].mxu0 %v1236_v58 }
  0x4c   :  { %753 = vmatmul.mubr.bf16.gmra.mrb[20].mxu1 %v1237_v59  ;;  %663 = vmatprep.mubr.bf16.mxu0 %v1238_v60 }
  0x4d   :  { %760 = vmatprep.mubr.bf16.mxu1 %v1240_v61 }
  0x53   :  { %664 = vmatmul.mubr.bf16.gmra.mrb[24].mxu0 %v1242_v62 }
  0x54   :  { %761 = vmatmul.mubr.bf16.gmra.mrb[24].mxu1 %v1243_v63  ;;  %671 = vmatprep.mubr.bf16.mxu0 %v1245_v0 }
  0x55   :  { %768 = vmatprep.mubr.bf16.mxu1 %v1247_v1 }
  0x5b   :  { %672 = vmatmul.mubr.bf16.gmra.mrb[28].mxu0 %v1249_v2 }
  0x5c   :  { %769 = vmatmul.mubr.bf16.gmra.mrb[28].mxu1 %v1250_v3  ;;  %1143 = vmatprep.mubr.msk.bf16.mxu0 %vm558_vm0, %v1251_v4 }
  0x5d   :  { %1151 = vmatprep.mubr.msk.bf16.mxu1 %vm558_vm0, %v1252_v5 }
  0x63   :  { %1144 = vmatmul.mubr.msk.bf16.vlgmr.msra.gmra.mrb[32].mxu0 %vm558_vm0, %v1253_v6 }
  0x64   :  { %1152 = vmatmul.mubr.msk.bf16.vlgmr.msra.gmra.mrb[32].mxu1 %vm558_vm0, %v1254_v7  ;;  %1147 = vmatprep.mubr.msk.bf16.mxu0 %vm558_vm0, %v1255_v8 }
  0x65   :  { %1155 = vmatprep.mubr.msk.bf16.mxu1 %vm558_vm0, %v1256_v9 }
  0x6b   :  { %1148 = vmatmul.mubr.msk.bf16.gmra.mrb[36].mxu0 %vm558_vm0, %v1257_v10 }
  0x6c   :  { %1156 = vmatmul.mubr.msk.bf16.gmra.mrb[36].mxu1 %vm558_vm0, %v1258_v11 }
  0xf6   :  { %v1011_v12 = vpop.f32.mrb[0].mxu0 }
  0xf7   :  { %v1075_v13 = vpop.f32.mrb[0].mxu1  ;;  %v1012_v15 = vpop.f32.mrb[1].mxu0 }
  0xf8   :  { %v1013_v16 = vadd.f32 %v1012_v15, %v1011_v12  ;;  %v1076_v17 = vpop.f32.mrb[1].mxu1  ;;  %v1014_v18 = vpop.f32.mrb[2].mxu0 }
  0xf9   :  { %v1077_v19 = vadd.f32 %v1076_v17, %v1075_v13  ;;  %v1078_v20 = vpop.f32.mrb[2].mxu1  ;;  %v1015_v21 = vpop.f32.mrb[3].mxu0 }
  0xfa   :  { %v618_v22 = vadd.f32 %v1013_v16, %v1518_v14  ;;  %v1016_v23 = vadd.f32 %v1015_v21, %v1014_v18  ;;  %v1079_v24 = vpop.f32.mrb[3].mxu1 }
  0xfb   :  { %v1080_v25 = vadd.f32 %v1079_v24, %v1078_v20 }
  0xfc   :  { %v621_v26 = vadd.f32 %v1016_v23, %v1518_v14  ;;  %v1522_v27 = vadd.f32 %v1077_v19, %v618_v22 }
  0xfe   :  { %v1017_v28 = vpop.f32.mrb[4].mxu0  ;;  %v1524_v29 = vadd.f32 %v1080_v25, %v621_v26 }
  0xff   :  { %v1081_v30 = vpop.f32.mrb[4].mxu1  ;;  %v1018_v31 = vpop.f32.mrb[5].mxu0 }
 0x100   :  { %v1019_v32 = vadd.f32 %v1018_v31, %v1017_v28  ;;  %v1082_v33 = vpop.f32.mrb[5].mxu1  ;;  %v1020_v34 = vpop.f32.mrb[6].mxu0 }
 0x101   :  { %v1083_v35 = vadd.f32 %v1082_v33, %v1081_v30  ;;  %v1084_v36 = vpop.f32.mrb[6].mxu1  ;;  %v1021_v37 = vpop.f32.mrb[7].mxu0 }
 0x102   :  { %v626_v38 = vadd.f32 %v1019_v32, %v1518_v14  ;;  %v1022_v39 = vadd.f32 %v1021_v37, %v1020_v34  ;;  %v1085_v40 = vpop.f32.mrb[7].mxu1 }
 0x103   :  { %v1086_v41 = vadd.f32 %v1085_v40, %v1084_v36 }
 0x104   :  { %v629_v42 = vadd.f32 %v1022_v39, %v1518_v14  ;;  %v1528_v43 = vadd.f32 %v1083_v35, %v626_v38 }
 0x106   :  { %v1023_v44 = vpop.f32.mrb[8].mxu0  ;;  %v1530_v45 = vadd.f32 %v1086_v41, %v629_v42 }
 0x107   :  { %v1087_v46 = vpop.f32.mrb[8].mxu1  ;;  %v1024_v47 = vpop.f32.mrb[9].mxu0 }
 0x108   :  { %v1025_v48 = vadd.f32 %v1024_v47, %v1023_v44  ;;  %v1088_v49 = vpop.f32.mrb[9].mxu1  ;;  %v1026_v50 = vpop.f32.mrb[10].mxu0 }
 0x109   :  { %v1089_v51 = vadd.f32 %v1088_v49, %v1087_v46  ;;  %v1090_v52 = vpop.f32.mrb[10].mxu1  ;;  %v1027_v53 = vpop.f32.mrb[11].mxu0 }
 0x10a   :  { %v634_v54 = vadd.f32 %v1025_v48, %v1518_v14  ;;  %v1028_v55 = vadd.f32 %v1027_v53, %v1026_v50  ;;  %v1091_v56 = vpop.f32.mrb[11].mxu1 }
 0x10b   :  { %v1092_v57 = vadd.f32 %v1091_v56, %v1090_v52 }
 0x10c   :  { %v637_v58 = vadd.f32 %v1028_v55, %v1518_v14  ;;  %v1534_v59 = vadd.f32 %v1089_v51, %v634_v54 }
 0x10e   :  { %v1029_v60 = vpop.f32.mrb[12].mxu0  ;;  %v1536_v61 = vadd.f32 %v1092_v57, %v637_v58 }
 0x10f   :  { %v1093_v62 = vpop.f32.mrb[12].mxu1  ;;  %v1030_v63 = vpop.f32.mrb[13].mxu0 }
 0x110   :  { %v1031_v0 = vadd.f32 %v1030_v63, %v1029_v60  ;;  %v1094_v1 = vpop.f32.mrb[13].mxu1  ;;  %v1032_v2 = vpop.f32.mrb[14].mxu0 }
 0x111   :  { %v1095_v3 = vadd.f32 %v1094_v1, %v1093_v62  ;;  %v1096_v4 = vpop.f32.mrb[14].mxu1  ;;  %v1033_v5 = vpop.f32.mrb[15].mxu0 }
 0x112   :  { %v642_v6 = vadd.f32 %v1031_v0, %v1518_v14  ;;  %v1034_v7 = vadd.f32 %v1033_v5, %v1032_v2  ;;  %v1097_v8 = vpop.f32.mrb[15].mxu1 }
 0x113   :  { %v1098_v9 = vadd.f32 %v1097_v8, %v1096_v4 }
 0x114   :  { %v645_v10 = vadd.f32 %v1034_v7, %v1518_v14  ;;  %v1540_v11 = vadd.f32 %v1095_v3, %v642_v6 }
 0x116   :  { %v1035_v12 = vpop.f32.mrb[16].mxu0  ;;  %v1542_v13 = vadd.f32 %v1098_v9, %v645_v10 }
 0x117   :  { %v1099_v15 = vpop.f32.mrb[16].mxu1  ;;  %v1036_v16 = vpop.f32.mrb[17].mxu0 }
 0x118   :  { %v1037_v17 = vadd.f32 %v1036_v16, %v1035_v12  ;;  %v1100_v18 = vpop.f32.mrb[17].mxu1  ;;  %v1038_v19 = vpop.f32.mrb[18].mxu0 }
 0x119   :  { %v1101_v20 = vadd.f32 %v1100_v18, %v1099_v15  ;;  %v1102_v21 = vpop.f32.mrb[18].mxu1  ;;  %v1039_v22 = vpop.f32.mrb[19].mxu0 }
 0x11a   :  { %v650_v23 = vadd.f32 %v1037_v17, %v1518_v14  ;;  %v1040_v24 = vadd.f32 %v1039_v22, %v1038_v19  ;;  %v1103_v25 = vpop.f32.mrb[19].mxu1 }
 0x11b   :  { %v1104_v26 = vadd.f32 %v1103_v25, %v1102_v21 }
 0x11c   :  { %v653_v28 = vadd.f32 %v1040_v24, %v1518_v14  ;;  %v747_v30 = vadd.f32 %v1101_v20, %v650_v23 }
 0x11e   :  { %v1041_v31 = vpop.f32.mrb[20].mxu0  ;;  %v1546_v32 = vadd.f32 %v1104_v26, %v653_v28 }
 0x11f   :  { %v1105_v33 = vpop.f32.mrb[20].mxu1  ;;  %v1042_v34 = vpop.f32.mrb[21].mxu0 }
 0x120   :  { %v1043_v35 = vadd.f32 %v1042_v34, %v1041_v31  ;;  %v1106_v36 = vpop.f32.mrb[21].mxu1  ;;  %v1044_v37 = vpop.f32.mrb[22].mxu0 }
 0x121   :  { %v1107_v38 = vadd.f32 %v1106_v36, %v1105_v33  ;;  %v1108_v39 = vpop.f32.mrb[22].mxu1  ;;  %v1045_v40 = vpop.f32.mrb[23].mxu0 }
 0x122   :  { %v658_v41 = vadd.f32 %v1043_v35, %v1518_v14  ;;  %v1046_v42 = vadd.f32 %v1045_v40, %v1044_v37  ;;  %v1109_v44 = vpop.f32.mrb[23].mxu1 }
 0x123   :  { %v1110_v46 = vadd.f32 %v1109_v44, %v1108_v39 }
 0x124   :  { %v661_v47 = vadd.f32 %v1046_v42, %v1518_v14  ;;  %v755_v48 = vadd.f32 %v1107_v38, %v658_v41 }
 0x126   :  { %v1047_v49 = vpop.f32.mrb[24].mxu0  ;;  %v758_v50 = vadd.f32 %v1110_v46, %v661_v47 }
 0x127   :  { %v1111_v51 = vpop.f32.mrb[24].mxu1  ;;  %v1048_v52 = vpop.f32.mrb[25].mxu0 }
 0x128   :  { %v1049_v53 = vadd.f32 %v1048_v52, %v1047_v49  ;;  %v1112_v54 = vpop.f32.mrb[25].mxu1  ;;  %v1050_v55 = vpop.f32.mrb[26].mxu0 }
 0x129   :  { %v1113_v56 = vadd.f32 %v1112_v54, %v1111_v51  ;;  %v1114_v57 = vpop.f32.mrb[26].mxu1  ;;  %v1051_v58 = vpop.f32.mrb[27].mxu0 }
 0x12a   :  { %v666_v60 = vadd.f32 %v1049_v53, %v1518_v14  ;;  %v1052_v62 = vadd.f32 %v1051_v58, %v1050_v55  ;;  %v1115_v63 = vpop.f32.mrb[27].mxu1 }
 0x12b   :  { %v1116_v0 = vadd.f32 %v1115_v63, %v1114_v57 }
 0x12c   :  { %v669_v1 = vadd.f32 %v1052_v62, %v1518_v14  ;;  %v763_v2 = vadd.f32 %v1113_v56, %v666_v60 }
 0x12e   :  { %v1053_v3 = vpop.f32.mrb[28].mxu0  ;;  %v1552_v4 = vadd.f32 %v1116_v0, %v669_v1 }
 0x12f   :  { %v1117_v5 = vpop.f32.mrb[28].mxu1  ;;  %v1054_v6 = vpop.f32.mrb[29].mxu0 }
 0x130   :  { %v1055_v7 = vadd.f32 %v1054_v6, %v1053_v3  ;;  %v1118_v8 = vpop.f32.mrb[29].mxu1  ;;  %v1056_v9 = vpop.f32.mrb[30].mxu0 }
 0x131   :  { %v1119_v10 = vadd.f32 %v1118_v8, %v1117_v5  ;;  %v1120_v12 = vpop.f32.mrb[30].mxu1  ;;  %v1057_v15 = vpop.f32.mrb[31].mxu0 }
 0x132   :  { %v674_v16 = vadd.f32 %v1055_v7, %v1518_v14  ;;  %v1058_v17 = vadd.f32 %v1057_v15, %v1056_v9  ;;  %v1121_v18 = vpop.f32.mrb[31].mxu1 }
 0x133   :  { %v1122_v19 = vadd.f32 %v1121_v18, %v1120_v12 }
 0x134   :  { %v677_v20 = vadd.f32 %v1058_v17, %v1518_v14  ;;  %v771_v21 = vadd.f32 %v1119_v10, %v674_v16 }
 0x136   :  { %v1145_v22 = vpop.f32.mrb[32].mxu0  ;;  %v774_v23 = vadd.f32 %v1122_v19, %v677_v20 }
 0x137   :  { %v820_v24 = vadd.f32 %v1145_v22, %v1528_v43  ;;  %v1153_v25 = vpop.f32.mrb[32].mxu1  ;;  %v811_v26 = vpop.f32.mrb[33].mxu0 }
 0x138   :  { %v852_v28 = vadd.f32 %v1153_v25, %v755_v48  ;;  %v812_v31 = vadd.f32 %v811_v26, %v1522_v27  ;;  %v843_v33 = vpop.f32.mrb[33].mxu1  ;;  %v1146_v34 = vpop.f32.mrb[34].mxu0 }
 0x139   :  { %v876_v35 = vmax.f32 %v820_v24, 0.0  ;;  %v844_v36 = vadd.f32 %v843_v33, %v747_v30  ;;  %v823_v37 = vadd.f32 %v1146_v34, %v1530_v45  ;;  %v1154_v38 = vpop.f32.mrb[34].mxu1  ;;  %v814_v39 = vpop.f32.mrb[35].mxu0 }
 0x13a   :  { %v884_v40 = vmax.f32 %v852_v28, 0.0  ;;  %v874_v14 = vmax.f32 %v812_v31, 0.0  ;;  %v855_v41 = vadd.f32 %v1154_v38, %v758_v50  ;;  %v815_v42 = vadd.f32 %v814_v39, %v1524_v29  ;;  %v846_v44 = vpop.f32.mrb[35].mxu1 }
 0x13b   :  { %892 = vst.msk [vmem:[%s1633_s3 + $0x10] sm:$0xff] %vm558_vm0, %v876_v35  ;;  %v882_v27 = vmax.f32 %v844_v36, 0.0  ;;  %v877_v43 = vmax.f32 %v823_v37, 0.0  ;;  %v847_v46 = vadd.f32 %v846_v44, %v1546_v32 }
 0x13c   :  { %900 = vst.msk [vmem:[%s1633_s3 + $0x50] sm:$0xff] %vm558_vm0, %v884_v40  ;;  %890 = vst.msk [vmem:[%s1633_s3] sm:$0xff] %vm558_vm0, %v874_v14  ;;  %v885_v29 = vmax.f32 %v855_v41, 0.0  ;;  %v875_v45 = vmax.f32 %v815_v42, 0.0 }
 0x13d   :  { %898 = vst.msk [vmem:[%s1633_s3 + $0x40] sm:$0xff] %vm558_vm0, %v882_v27  ;;  %893 = vst.msk [vmem:[%s1633_s3 + $0x18] sm:$0xff] %vm558_vm0, %v877_v43  ;;  %v883_v30 = vmax.f32 %v847_v46, 0.0 }
 0x13e   :  { %901 = vst.msk [vmem:[%s1633_s3 + $0x58] sm:$0xff] %vm558_vm0, %v885_v29  ;;  %891 = vst.msk [vmem:[%s1633_s3 + $0x8] sm:$0xff] %vm558_vm0, %v875_v45  ;;  %v1149_v32 = vpop.f32.mrb[36].mxu0 }
 0x13f   :  { %899 = vst.msk [vmem:[%s1633_s3 + $0x48] sm:$0xff] %vm558_vm0, %v883_v30  ;;  %v836_v47 = vadd.f32 %v1149_v32, %v1540_v11  ;;  %v1157_v48 = vpop.f32.mrb[36].mxu1  ;;  %v827_v49 = vpop.f32.mrb[37].mxu0 }
 0x140   :  { %v868_v50 = vadd.f32 %v1157_v48, %v771_v21  ;;  %v828_v51 = vadd.f32 %v827_v49, %v1534_v59  ;;  %v859_v52 = vpop.f32.mrb[37].mxu1  ;;  %v1150_v53 = vpop.f32.mrb[38].mxu0 }
 0x141   :  { %v880_v54 = vmax.f32 %v836_v47, 0.0  ;;  %v860_v55 = vadd.f32 %v859_v52, %v763_v2  ;;  %v839_v56 = vadd.f32 %v1150_v53, %v1542_v13  ;;  %v1158_v57 = vpop.f32.mrb[38].mxu1  ;;  %v830_v58 = vpop.f32.mrb[39].mxu0 }
 0x142   :  { %v888_v60 = vmax.f32 %v868_v50, 0.0  ;;  %v878_v62 = vmax.f32 %v828_v51, 0.0  ;;  %v871_v63 = vadd.f32 %v1158_v57, %v774_v23  ;;  %v831_v0 = vadd.f32 %v830_v58, %v1536_v61  ;;  %v862_v1 = vpop.f32.mrb[39].mxu1 }
 0x143   :  { %896 = vst.msk [vmem:[%s1633_s3 + $0x30] sm:$0xff] %vm558_vm0, %v880_v54  ;;  %v886_v59 = vmax.f32 %v860_v55, 0.0  ;;  %v881_v11 = vmax.f32 %v839_v56, 0.0  ;;  %v863_v3 = vadd.f32 %v862_v1, %v1552_v4 }
 0x144   :  { %904 = vst.msk [vmem:[%s1633_s3 + $0x70] sm:$0xff] %vm558_vm0, %v888_v60  ;;  %894 = vst.msk [vmem:[%s1633_s3 + $0x20] sm:$0xff] %vm558_vm0, %v878_v62  ;;  %v889_v61 = vmax.f32 %v871_v63, 0.0  ;;  %v879_v13 = vmax.f32 %v831_v0, 0.0 }
 0x145   :  { %902 = vst.msk [vmem:[%s1633_s3 + $0x60] sm:$0xff] %vm558_vm0, %v886_v59  ;;  %897 = vst.msk [vmem:[%s1633_s3 + $0x38] sm:$0xff] %vm558_vm0, %v881_v11  ;;  %v887_v2 = vmax.f32 %v863_v3, 0.0 }
 0x146   :  { %905 = vst.msk [vmem:[%s1633_s3 + $0x78] sm:$0xff] %vm558_vm0, %v889_v61  ;;  %895 = vst.msk [vmem:[%s1633_s3 + $0x28] sm:$0xff] %vm558_vm0, %v879_v13 }
 0x147   :  { %903 = vst.msk [vmem:[%s1633_s3 + $0x68] sm:$0xff] %vm558_vm0, %v887_v2 }

// kernel: dae_forward.15
= control target key start
LH: loop header
LB: loop body
LE: loop exit
PB: predicated region body
PF: predicated region fallthrough
CT: control target
= control target key end

     0   :  { %vm561_vm0 = vcmask 523264   ;;  %s1743_s1 = inlined_call_operand.vmem [shape: bf16[576,64], index: 1, kind: input, shape index: {}]   ;;  %s1744_s0 = inlined_call_operand.vmem [shape: bf16[128,576], index: 0, kind: input, shape index: {}]   ;;  %s1745_s2 = inlined_call_operand.vmem [shape: f32[1,64], index: 2, kind: input, shape index: {}]   ;;  %s1746_s3 = inlined_call_operand.vmem [shape: f32[128,64], index: 3, kind: input, shape index: {}]   ;;  %s1747_s4 = inlined_call_operand.vmem [shape: f32[128,64], index: 4, kind: output, shape index: {}]  }
   0x1   :  { %v1218_v0 = vld [vmem:[%s1743_s1 + $0x40] sm:$0xff]   ;;  %v1222_v4 = vld [vmem:[%s1743_s1 + $0x48] sm:$0xff]   ;;  %v1226_v8 = vld [vmem:[%s1743_s1 + $0x50] sm:$0xff]  }
   0x2   :  { %v1219_v1 = vld [vmem:[%s1743_s1 + $0xc0] sm:$0xff]   ;;  %1046 = vmatprep.subr.bf16.mxu0 %v1218_v0  ;;  %v1223_v5 = vld [vmem:[%s1743_s1 + $0xc8] sm:$0xff]   ;;  %v1227_v9 = vld [vmem:[%s1743_s1 + $0xd0] sm:$0xff]  }
   0x3   :  { %v1220_v2 = vld [vmem:[%s1743_s1] sm:$0xff]   ;;  %1110 = vmatprep.subr.bf16.mxu1 %v1219_v1  ;;  %v1224_v6 = vld [vmem:[%s1743_s1 + $0x8] sm:$0xff]   ;;  %v1228_v10 = vld [vmem:[%s1743_s1 + $0x10] sm:$0xff]  }
   0x4   :  { %v1221_v3 = vld [vmem:[%s1743_s1 + $0x80] sm:$0xff]   ;;  %1047 = vmatpush3.bf16.msra.mxu0 %v1220_v2  ;;  %v1225_v7 = vld [vmem:[%s1743_s1 + $0x88] sm:$0xff]   ;;  %v1229_v11 = vld [vmem:[%s1743_s1 + $0x90] sm:$0xff]  }
   0x5   :  { %1111 = vmatpush3.bf16.msra.mxu1 %v1221_v3  ;;  %1048 = vmatprep.subr.bf16.mxu0 %v1222_v4  ;;  %v1230_v12 = vld [vmem:[%s1743_s1 + $0x58] sm:$0xff]   ;;  %v1234_v16 = vld [vmem:[%s1743_s1 + $0x60] sm:$0xff]   ;;  %v1238_v20 = vld [vmem:[%s1743_s1 + $0x68] sm:$0xff]  }
   0x6   :  { %1112 = vmatprep.subr.bf16.mxu1 %v1223_v5  ;;  %v1231_v13 = vld [vmem:[%s1743_s1 + $0xd8] sm:$0xff]   ;;  %v1235_v17 = vld [vmem:[%s1743_s1 + $0xe0] sm:$0xff]   ;;  %v1239_v21 = vld [vmem:[%s1743_s1 + $0xe8] sm:$0xff]  }
   0x7   :  { %v1232_v14 = vld [vmem:[%s1743_s1 + $0x18] sm:$0xff]   ;;  %v1236_v18 = vld [vmem:[%s1743_s1 + $0x20] sm:$0xff]   ;;  %v1240_v22 = vld [vmem:[%s1743_s1 + $0x28] sm:$0xff]  }
   0x8   :  { %1049 = vmatpush3.bf16.msra.mxu0 %v1224_v6  ;;  %v1233_v15 = vld [vmem:[%s1743_s1 + $0x98] sm:$0xff]   ;;  %v1237_v19 = vld [vmem:[%s1743_s1 + $0xa0] sm:$0xff]   ;;  %v1241_v23 = vld [vmem:[%s1743_s1 + $0xa8] sm:$0xff]  }
   0x9   :  { %1113 = vmatpush3.bf16.msra.mxu1 %v1225_v7  ;;  %1050 = vmatprep.subr.bf16.mxu0 %v1226_v8  ;;  %v1242_v24 = vld [vmem:[%s1743_s1 + $0x70] sm:$0xff]   ;;  %v1246_v28 = vld [vmem:[%s1743_s1 + $0x78] sm:$0xff]   ;;  %v1255_v35 = vld [vmem:[%s1744_s0 + $0xc] ss:$20 sps:$4 sm:$0xff]  }
   0xa   :  { %1114 = vmatprep.subr.bf16.mxu1 %v1227_v9  ;;  %v1243_v25 = vld [vmem:[%s1743_s1 + $0xf0] sm:$0xff]   ;;  %v1247_v29 = vld [vmem:[%s1743_s1 + $0xf8] sm:$0xff]   ;;  %v1256_v36 = vld [vmem:[%s1743_s1 + $0x100] sm:$0xff]   ;;  %715 = vmatprep.mubr.bf16.mxu1 %v1255_v35 }
   0xb   :  { %v1244_v26 = vld [vmem:[%s1743_s1 + $0x30] sm:$0xff]   ;;  %v1248_v30 = vld [vmem:[%s1743_s1 + $0x38] sm:$0xff]   ;;  %v1257_v37 = vld [vmem:[%s1744_s0 + $0x2c] ss:$20 sps:$4 sm:$0xff]  }
   0xc   :  { %1051 = vmatpush3.bf16.msra.mxu0 %v1228_v10  ;;  %v1245_v27 = vld [vmem:[%s1743_s1 + $0xb0] sm:$0xff]   ;;  %v1249_v31 = vld [vmem:[%s1743_s1 + $0xb8] sm:$0xff]   ;;  %v1269_v42 = vld [vmem:[%s1743_s1 + $0x108] sm:$0xff]  }
   0xd   :  { %1115 = vmatpush3.bf16.msra.mxu1 %v1229_v11  ;;  %1052 = vmatprep.subr.bf16.mxu0 %v1230_v12  ;;  %v1250_v32 = vld [vmem:[%s1744_s0] ss:$20 sps:$4 sm:$0xff]   ;;  %v1252_v33 = vld [vmem:[%s1744_s0 + $0x4] ss:$20 sps:$4 sm:$0xff]   ;;  %v1253_v34 = vld [vmem:[%s1744_s0 + $0x8] ss:$20 sps:$4 sm:$0xff]  }
   0xe   :  { %1116 = vmatprep.subr.bf16.mxu1 %v1231_v13  ;;  %618 = vmatprep.mubr.bf16.mxu0 %v1252_v33  ;;  %v1259_v38 = vld [vmem:[%s1744_s0 + $0x34] ss:$20 sps:$4 sm:$0xff]   ;;  %v1262_v40 = vld [vmem:[%s1744_s0 + $0x30] ss:$20 sps:$4 sm:$0xff]   ;;  %v1268_v45 = vld [vmem:[%s1744_s0 + $0x58] ss:$20 sps:$4 sm:$0xff]  }
   0xf   :  { %v1261_v39 = vld [vmem:[%s1744_s0 + $0x28] ss:$20 sps:$4 sm:$0xff]   ;;  %v1267_v44 = vld [vmem:[%s1744_s0 + $0x50] ss:$20 sps:$4 sm:$0xff]   ;;  %v1274_v50 = vld [vmem:[%s1744_s0 + $0x78] ss:$20 sps:$4 sm:$0xff]  }
  0x10   :  { %1053 = vmatpush3.bf16.msra.mxu0 %v1232_v14  ;;  %v1263_v41 = vld [vmem:[%s1744_s0 + $0x54] ss:$20 sps:$4 sm:$0xff]   ;;  %v1265_v43 = vld [vmem:[%s1744_s0 + $0x5c] ss:$20 sps:$4 sm:$0xff]   ;;  %v1272_v48 = vld [vmem:[%s1744_s0 + $0x84] ss:$20 sps:$4 sm:$0xff]  }
  0x11   :  { %1117 = vmatpush3.bf16.msra.mxu1 %v1233_v15  ;;  %1054 = vmatprep.subr.bf16.mxu0 %v1234_v16  ;;  %v1282_v46 = vld [vmem:[%s1743_s1 + $0x110] sm:$0xff]   ;;  %v1295_v49 = vld [vmem:[%s1743_s1 + $0x118] sm:$0xff]   ;;  %v1278_v53 = vld [vmem:[%s1744_s0 + $0xac] ss:$20 sps:$4 sm:$0xff]  }
  0x12   :  { %1118 = vmatprep.subr.bf16.mxu1 %v1235_v17  ;;  %v1270_v47 = vld [vmem:[%s1744_s0 + $0x7c] ss:$20 sps:$4 sm:$0xff]   ;;  %v1275_v51 = vld [vmem:[%s1744_s0 + $0x80] ss:$20 sps:$4 sm:$0xff]   ;;  %v1276_v52 = vld [vmem:[%s1744_s0 + $0xa4] ss:$20 sps:$4 sm:$0xff]  }
  0x13   :  { %v1280_v54 = vld [vmem:[%s1744_s0 + $0xa0] ss:$20 sps:$4 sm:$0xff]   ;;  %v1281_v55 = vld [vmem:[%s1744_s0 + $0xa8] ss:$20 sps:$4 sm:$0xff]   ;;  %v1288_v59 = vld [vmem:[%s1744_s0 + $0xd0] ss:$20 sps:$4 sm:$0xff]  }
  0x14   :  { %1055 = vmatpush3.bf16.msra.mxu0 %v1236_v18  ;;  %v1283_v56 = vld [vmem:[%s1744_s0 + $0xcc] ss:$20 sps:$4 sm:$0xff]   ;;  %v1285_v57 = vld [vmem:[%s1744_s0 + $0xd4] ss:$20 sps:$4 sm:$0xff]   ;;  %v1291_v61 = vld [vmem:[%s1744_s0 + $0xfc] ss:$20 sps:$4 sm:$0xff]  }
  0x15   :  { %1119 = vmatpush3.bf16.msra.mxu1 %v1237_v19  ;;  %1056 = vmatprep.subr.bf16.mxu0 %v1238_v20  ;;  %v1287_v58 = vld [vmem:[%s1744_s0 + $0xc8] ss:$20 sps:$4 sm:$0xff]   ;;  %v1293_v62 = vld [vmem:[%s1744_s0 + $0xf0] ss:$20 sps:$4 sm:$0xff]   ;;  %v1294_v63 = vld [vmem:[%s1744_s0 + $0xf8] ss:$20 sps:$4 sm:$0xff]  }
  0x16   :  { %1120 = vmatprep.subr.bf16.mxu1 %v1239_v21  ;;  %v1289_v60 = vld [vmem:[%s1744_s0 + $0xf4] ss:$20 sps:$4 sm:$0xff]   ;;  %v1296_v0 = vld [vmem:[%s1744_s0 + $0x11c] ss:$20 sps:$4 sm:$0xff]   ;;  %v1298_v1 = vld [vmem:[%s1744_s0 + $0x124] ss:$20 sps:$4 sm:$0xff]  }
  0x17   :  { %v1300_v2 = vld [vmem:[%s1744_s0 + $0x118] ss:$20 sps:$4 sm:$0xff]   ;;  %v1301_v3 = vld [vmem:[%s1744_s0 + $0x120] ss:$20 sps:$4 sm:$0xff]   ;;  %v1302_v4 = vld [vmem:[%s1744_s0 + $0x10] ss:$20 sps:$4 sm:$0xff]  }
  0x18   :  { %1057 = vmatpush3.bf16.msra.mxu0 %v1240_v22  ;;  %v1303_v5 = vld [vmem:[%s1744_s0 + $0xb0] ss:$20 sps:$4 sm:$0xff]   ;;  %v1304_v6 = vld [vmem:[%s1744_s0 + $0x38] ss:$20 sps:$4 sm:$0xff]   ;;  %v1306_v8 = vld [vmem:[%s1744_s0 + $0x60] ss:$20 sps:$4 sm:$0xff]  }
  0x19   :  { %1121 = vmatpush3.bf16.msra.mxu1 %v1241_v23  ;;  %1058 = vmatprep.subr.bf16.mxu0 %v1242_v24  ;;  %v1305_v7 = vld [vmem:[%s1744_s0 + $0xd8] ss:$20 sps:$4 sm:$0xff]   ;;  %v1307_v9 = vld [vmem:[%s1744_s0 + $0x100] ss:$20 sps:$4 sm:$0xff]   ;;  %v1308_v10 = vld [vmem:[%s1744_s0 + $0x88] ss:$20 sps:$4 sm:$0xff]  }
  0x1a   :  { %1122 = vmatprep.subr.bf16.mxu1 %v1243_v25  ;;  %v1309_v11 = vld [vmem:[%s1744_s0 + $0x128] ss:$20 sps:$4 sm:$0xff]   ;;  %v1574_v14 = vld [vmem:[%s1745_s2] ss:$0 sm:$0xff] }
  0x1c   :  { %1059 = vmatpush3.bf16.msra.mxu0 %v1244_v26 }
  0x1d   :  { %1123 = vmatpush3.bf16.msra.mxu1 %v1245_v27  ;;  %1060 = vmatprep.subr.bf16.mxu0 %v1246_v28 }
  0x1e   :  { %1124 = vmatprep.subr.bf16.mxu1 %v1247_v29 }
  0x20   :  { %1061 = vmatpush3.bf16.msra.mxu0 %v1248_v30 }
  0x21   :  { %1125 = vmatpush3.bf16.msra.mxu1 %v1249_v31  ;;  %1186 = vmatprep.subr.bf16.mxu0 %v1256_v36 }
  0x22   :  { %1210 = vmatprep.subr.bf16.mxu1 %v1256_v36 }
  0x23   :  { %619 = vmatmul.mubr.bf16.vlgmr.msra.gmra.mrb[0].mxu0 %v1250_v32 }
  0x24   :  { %716 = vmatmul.mubr.bf16.vlgmr.msra.gmra.mrb[0].mxu1 %v1253_v34  ;;  %1187 = vmatpush3.bf16.msra.mxu0 %v1256_v36 }
  0x25   :  { %1214 = vmatpush3.bf16.msra.mxu1 %v1256_v36  ;;  %626 = vmatprep.mubr.bf16.mxu0 %v1257_v37 }
  0x26   :  { %723 = vmatprep.mubr.bf16.mxu1 %v1259_v38  ;;  %1188 = vmatprep.subr.bf16.mxu0 %v1269_v42 }
  0x27   :  { %1211 = vmatprep.subr.bf16.mxu1 %v1269_v42 }
  0x28   :  { %1189 = vmatpush3.bf16.msra.mxu0 %v1269_v42 }
  0x29   :  { %1215 = vmatpush3.bf16.msra.mxu1 %v1269_v42  ;;  %1190 = vmatprep.subr.bf16.mxu0 %v1282_v46 }
  0x2a   :  { %1212 = vmatprep.subr.bf16.mxu1 %v1282_v46 }
  0x2b   :  { %627 = vmatmul.mubr.bf16.gmra.mrb[4].mxu0 %v1261_v39 }
  0x2c   :  { %724 = vmatmul.mubr.bf16.gmra.mrb[4].mxu1 %v1262_v40  ;;  %634 = vmatprep.mubr.bf16.mxu0 %v1263_v41 }
  0x2d   :  { %731 = vmatprep.mubr.bf16.mxu1 %v1265_v43  ;;  %1191 = vmatpush3.bf16.msra.mxu0 %v1282_v46 }
  0x2e   :  { %1216 = vmatpush3.bf16.msra.mxu1 %v1282_v46  ;;  %1192 = vmatprep.subr.bf16.mxu0 %v1295_v49 }
  0x2f   :  { %1213 = vmatprep.subr.bf16.mxu1 %v1295_v49 }
  0x31   :  { %1193 = vmatpush3.bf16.msra.mxu0 %v1295_v49 }
  0x32   :  { %1217 = vmatpush3.bf16.msra.mxu1 %v1295_v49 }
  0x33   :  { %635 = vmatmul.mubr.bf16.gmra.mrb[8].mxu0 %v1267_v44 }
  0x34   :  { %732 = vmatmul.mubr.bf16.gmra.mrb[8].mxu1 %v1268_v45  ;;  %642 = vmatprep.mubr.bf16.mxu0 %v1270_v47 }
  0x35   :  { %739 = vmatprep.mubr.bf16.mxu1 %v1272_v48 }
  0x3b   :  { %643 = vmatmul.mubr.bf16.gmra.mrb[12].mxu0 %v1274_v50 }
  0x3c   :  { %740 = vmatmul.mubr.bf16.gmra.mrb[12].mxu1 %v1275_v51  ;;  %650 = vmatprep.mubr.bf16.mxu0 %v1276_v52 }
  0x3d   :  { %747 = vmatprep.mubr.bf16.mxu1 %v1278_v53 }
  0x43   :  { %651 = vmatmul.mubr.bf16.gmra.mrb[16].mxu0 %v1280_v54 }
  0x44   :  { %748 = vmatmul.mubr.bf16.gmra.mrb[16].mxu1 %v1281_v55  ;;  %658 = vmatprep.mubr.bf16.mxu0 %v1283_v56 }
  0x45   :  { %755 = vmatprep.mubr.bf16.mxu1 %v1285_v57 }
  0x4b   :  { %659 = vmatmul.mubr.bf16.gmra.mrb[20].mxu0 %v1287_v58 }
  0x4c   :  { %756 = vmatmul.mubr.bf16.gmra.mrb[20].mxu1 %v1288_v59  ;;  %666 = vmatprep.mubr.bf16.mxu0 %v1289_v60 }
  0x4d   :  { %763 = vmatprep.mubr.bf16.mxu1 %v1291_v61 }
  0x53   :  { %667 = vmatmul.mubr.bf16.gmra.mrb[24].mxu0 %v1293_v62 }
  0x54   :  { %764 = vmatmul.mubr.bf16.gmra.mrb[24].mxu1 %v1294_v63  ;;  %674 = vmatprep.mubr.bf16.mxu0 %v1296_v0 }
  0x55   :  { %771 = vmatprep.mubr.bf16.mxu1 %v1298_v1 }
  0x5b   :  { %675 = vmatmul.mubr.bf16.gmra.mrb[28].mxu0 %v1300_v2 }
  0x5c   :  { %772 = vmatmul.mubr.bf16.gmra.mrb[28].mxu1 %v1301_v3  ;;  %1194 = vmatprep.mubr.msk.bf16.mxu0 %vm561_vm0, %v1302_v4 }
  0x5d   :  { %1202 = vmatprep.mubr.msk.bf16.mxu1 %vm561_vm0, %v1303_v5 }
  0x63   :  { %1195 = vmatmul.mubr.msk.bf16.vlgmr.msra.gmra.mrb[32].mxu0 %vm561_vm0, %v1304_v6 }
  0x64   :  { %1203 = vmatmul.mubr.msk.bf16.vlgmr.msra.gmra.mrb[32].mxu1 %vm561_vm0, %v1305_v7  ;;  %1198 = vmatprep.mubr.msk.bf16.mxu0 %vm561_vm0, %v1306_v8 }
  0x65   :  { %1206 = vmatprep.mubr.msk.bf16.mxu1 %vm561_vm0, %v1307_v9 }
  0x6b   :  { %1199 = vmatmul.mubr.msk.bf16.gmra.mrb[36].mxu0 %vm561_vm0, %v1308_v10 }
  0x6c   :  { %1207 = vmatmul.mubr.msk.bf16.gmra.mrb[36].mxu1 %vm561_vm0, %v1309_v11 }
  0xf6   :  { %v1062_v12 = vpop.f32.mrb[0].mxu0 }
  0xf7   :  { %v1126_v13 = vpop.f32.mrb[0].mxu1  ;;  %v1063_v15 = vpop.f32.mrb[1].mxu0 }
  0xf8   :  { %v1064_v16 = vadd.f32 %v1063_v15, %v1062_v12  ;;  %v1127_v17 = vpop.f32.mrb[1].mxu1  ;;  %v1065_v18 = vpop.f32.mrb[2].mxu0 }
  0xf9   :  { %v1128_v19 = vadd.f32 %v1127_v17, %v1126_v13  ;;  %v1129_v20 = vpop.f32.mrb[2].mxu1  ;;  %v1066_v21 = vpop.f32.mrb[3].mxu0 }
  0xfa   :  { %v621_v22 = vadd.f32 %v1064_v16, %v1574_v14  ;;  %v1067_v23 = vadd.f32 %v1066_v21, %v1065_v18  ;;  %v1130_v24 = vpop.f32.mrb[3].mxu1 }
  0xfb   :  { %v1131_v25 = vadd.f32 %v1130_v24, %v1129_v20 }
  0xfc   :  { %v624_v26 = vadd.f32 %v1067_v23, %v1574_v14  ;;  %v1578_v27 = vadd.f32 %v1128_v19, %v621_v22 }
  0xfe   :  { %v1068_v28 = vpop.f32.mrb[4].mxu0  ;;  %v1580_v29 = vadd.f32 %v1131_v25, %v624_v26 }
  0xff   :  { %v1132_v30 = vpop.f32.mrb[4].mxu1  ;;  %v1069_v31 = vpop.f32.mrb[5].mxu0 }
 0x100   :  { %v1070_v32 = vadd.f32 %v1069_v31, %v1068_v28  ;;  %v1133_v33 = vpop.f32.mrb[5].mxu1  ;;  %v1071_v34 = vpop.f32.mrb[6].mxu0 }
 0x101   :  { %v1134_v35 = vadd.f32 %v1133_v33, %v1132_v30  ;;  %v1135_v36 = vpop.f32.mrb[6].mxu1  ;;  %v1072_v37 = vpop.f32.mrb[7].mxu0 }
 0x102   :  { %v629_v38 = vadd.f32 %v1070_v32, %v1574_v14  ;;  %v1073_v39 = vadd.f32 %v1072_v37, %v1071_v34  ;;  %v1136_v40 = vpop.f32.mrb[7].mxu1 }
 0x103   :  { %v1137_v41 = vadd.f32 %v1136_v40, %v1135_v36 }
 0x104   :  { %v632_v42 = vadd.f32 %v1073_v39, %v1574_v14  ;;  %v1584_v43 = vadd.f32 %v1134_v35, %v629_v38 }
 0x106   :  { %v1074_v44 = vpop.f32.mrb[8].mxu0  ;;  %v1586_v45 = vadd.f32 %v1137_v41, %v632_v42 }
 0x107   :  { %v1138_v46 = vpop.f32.mrb[8].mxu1  ;;  %v1075_v47 = vpop.f32.mrb[9].mxu0 }
 0x108   :  { %v1076_v48 = vadd.f32 %v1075_v47, %v1074_v44  ;;  %v1139_v49 = vpop.f32.mrb[9].mxu1  ;;  %v1077_v50 = vpop.f32.mrb[10].mxu0 }
 0x109   :  { %v1140_v51 = vadd.f32 %v1139_v49, %v1138_v46  ;;  %v1141_v52 = vpop.f32.mrb[10].mxu1  ;;  %v1078_v53 = vpop.f32.mrb[11].mxu0 }
 0x10a   :  { %v637_v54 = vadd.f32 %v1076_v48, %v1574_v14  ;;  %v1079_v55 = vadd.f32 %v1078_v53, %v1077_v50  ;;  %v1142_v56 = vpop.f32.mrb[11].mxu1 }
 0x10b   :  { %v1143_v57 = vadd.f32 %v1142_v56, %v1141_v52 }
 0x10c   :  { %v640_v58 = vadd.f32 %v1079_v55, %v1574_v14  ;;  %v1590_v59 = vadd.f32 %v1140_v51, %v637_v54 }
 0x10e   :  { %v1080_v60 = vpop.f32.mrb[12].mxu0  ;;  %v1592_v61 = vadd.f32 %v1143_v57, %v640_v58 }
 0x10f   :  { %v1144_v62 = vpop.f32.mrb[12].mxu1  ;;  %v1081_v63 = vpop.f32.mrb[13].mxu0 }
 0x110   :  { %v1082_v0 = vadd.f32 %v1081_v63, %v1080_v60  ;;  %v1145_v1 = vpop.f32.mrb[13].mxu1  ;;  %v1083_v2 = vpop.f32.mrb[14].mxu0 }
 0x111   :  { %v1146_v3 = vadd.f32 %v1145_v1, %v1144_v62  ;;  %v1147_v4 = vpop.f32.mrb[14].mxu1  ;;  %v1084_v5 = vpop.f32.mrb[15].mxu0 }
 0x112   :  { %v645_v6 = vadd.f32 %v1082_v0, %v1574_v14  ;;  %v1085_v7 = vadd.f32 %v1084_v5, %v1083_v2  ;;  %v1148_v8 = vpop.f32.mrb[15].mxu1 }
 0x113   :  { %v1149_v9 = vadd.f32 %v1148_v8, %v1147_v4 }
 0x114   :  { %v648_v10 = vadd.f32 %v1085_v7, %v1574_v14  ;;  %v1596_v11 = vadd.f32 %v1146_v3, %v645_v6 }
 0x116   :  { %v1086_v12 = vpop.f32.mrb[16].mxu0  ;;  %v1598_v13 = vadd.f32 %v1149_v9, %v648_v10 }
 0x117   :  { %v1150_v15 = vpop.f32.mrb[16].mxu1  ;;  %v1087_v16 = vpop.f32.mrb[17].mxu0 }
 0x118   :  { %v1088_v17 = vadd.f32 %v1087_v16, %v1086_v12  ;;  %v1151_v18 = vpop.f32.mrb[17].mxu1  ;;  %v1089_v19 = vpop.f32.mrb[18].mxu0 }
 0x119   :  { %v1152_v20 = vadd.f32 %v1151_v18, %v1150_v15  ;;  %v1153_v21 = vpop.f32.mrb[18].mxu1  ;;  %v1090_v22 = vpop.f32.mrb[19].mxu0 }
 0x11a   :  { %v653_v23 = vadd.f32 %v1088_v17, %v1574_v14  ;;  %v1091_v24 = vadd.f32 %v1090_v22, %v1089_v19  ;;  %v1154_v25 = vpop.f32.mrb[19].mxu1 }
 0x11b   :  { %v1155_v26 = vadd.f32 %v1154_v25, %v1153_v21 }
 0x11c   :  { %v656_v28 = vadd.f32 %v1091_v24, %v1574_v14  ;;  %v1602_v30 = vadd.f32 %v1152_v20, %v653_v23 }
 0x11e   :  { %v1092_v31 = vpop.f32.mrb[20].mxu0  ;;  %v1604_v32 = vadd.f32 %v1155_v26, %v656_v28  ;;  %v895_v28 = vld [vmem:[%s1746_s3 + $0x10] sm:$0xff] }
 0x11f   :  { %v1156_v33 = vpop.f32.mrb[20].mxu1  ;;  %v1093_v34 = vpop.f32.mrb[21].mxu0 }
 0x120   :  { %v1094_v35 = vadd.f32 %v1093_v34, %v1092_v31  ;;  %v1157_v36 = vpop.f32.mrb[21].mxu1  ;;  %v1095_v37 = vpop.f32.mrb[22].mxu0 }
 0x121   :  { %v1158_v38 = vadd.f32 %v1157_v36, %v1156_v33  ;;  %v1159_v39 = vpop.f32.mrb[22].mxu1  ;;  %v1096_v40 = vpop.f32.mrb[23].mxu0 }
 0x122   :  { %v661_v41 = vadd.f32 %v1094_v35, %v1574_v14  ;;  %v1097_v42 = vadd.f32 %v1096_v40, %v1095_v37  ;;  %v1160_v44 = vpop.f32.mrb[23].mxu1 }
 0x123   :  { %v1161_v46 = vadd.f32 %v1160_v44, %v1159_v39  ;;  %v896_v44 = vld [vmem:[%s1746_s3 + $0x18] sm:$0xff] }
 0x124   :  { %v664_v47 = vadd.f32 %v1097_v42, %v1574_v14  ;;  %v758_v48 = vadd.f32 %v1158_v38, %v661_v41 }
 0x126   :  { %v1098_v49 = vpop.f32.mrb[24].mxu0  ;;  %v761_v50 = vadd.f32 %v1161_v46, %v664_v47 }
 0x127   :  { %v1162_v51 = vpop.f32.mrb[24].mxu1  ;;  %v1099_v52 = vpop.f32.mrb[25].mxu0 }
 0x128   :  { %v1100_v53 = vadd.f32 %v1099_v52, %v1098_v49  ;;  %v1163_v54 = vpop.f32.mrb[25].mxu1  ;;  %v1101_v55 = vpop.f32.mrb[26].mxu0  ;;  %v894_v52 = vld [vmem:[%s1746_s3 + $0x8] sm:$0xff] }
 0x129   :  { %v1164_v56 = vadd.f32 %v1163_v54, %v1162_v51  ;;  %v1165_v57 = vpop.f32.mrb[26].mxu1  ;;  %v1102_v58 = vpop.f32.mrb[27].mxu0 }
 0x12a   :  { %v669_v60 = vadd.f32 %v1100_v53, %v1574_v14  ;;  %v1103_v62 = vadd.f32 %v1102_v58, %v1101_v55  ;;  %v1166_v63 = vpop.f32.mrb[27].mxu1 }
 0x12b   :  { %v1167_v0 = vadd.f32 %v1166_v63, %v1165_v57 }
 0x12c   :  { %v672_v1 = vadd.f32 %v1103_v62, %v1574_v14  ;;  %v1610_v2 = vadd.f32 %v1164_v56, %v669_v60 }
 0x12e   :  { %v1104_v3 = vpop.f32.mrb[28].mxu0  ;;  %v1612_v4 = vadd.f32 %v1167_v0, %v672_v1 }
 0x12f   :  { %v1168_v5 = vpop.f32.mrb[28].mxu1  ;;  %v1105_v6 = vpop.f32.mrb[29].mxu0 }
 0x130   :  { %v1106_v7 = vadd.f32 %v1105_v6, %v1104_v3  ;;  %v1169_v8 = vpop.f32.mrb[29].mxu1  ;;  %v1107_v9 = vpop.f32.mrb[30].mxu0 }
 0x131   :  { %v1170_v10 = vadd.f32 %v1169_v8, %v1168_v5  ;;  %v1171_v12 = vpop.f32.mrb[30].mxu1  ;;  %v1108_v15 = vpop.f32.mrb[31].mxu0 }
 0x132   :  { %v677_v16 = vadd.f32 %v1106_v7, %v1574_v14  ;;  %v1109_v17 = vadd.f32 %v1108_v15, %v1107_v9  ;;  %v1172_v18 = vpop.f32.mrb[31].mxu1 }
 0x133   :  { %v1173_v19 = vadd.f32 %v1172_v18, %v1171_v12 }
 0x134   :  { %v680_v20 = vadd.f32 %v1109_v17, %v1574_v14  ;;  %v774_v21 = vadd.f32 %v1170_v10, %v677_v16  ;;  %v903_v14 = vld [vmem:[%s1746_s3 + $0x50] sm:$0xff] }
 0x135   :  { %v899_v16 = vld [vmem:[%s1746_s3 + $0x30] sm:$0xff] }
 0x136   :  { %v1196_v22 = vpop.f32.mrb[32].mxu0  ;;  %v1616_v23 = vadd.f32 %v1173_v19, %v680_v20 }
 0x137   :  { %v823_v24 = vadd.f32 %v1196_v22, %v1584_v43  ;;  %v1204_v25 = vpop.f32.mrb[32].mxu1  ;;  %v814_v26 = vpop.f32.mrb[33].mxu0  ;;  %v893_v43 = vld [vmem:[%s1746_s3] sm:$0xff] }
 0x138   :  { %v855_v31 = vadd.f32 %v1204_v25, %v758_v48  ;;  %v815_v33 = vadd.f32 %v814_v26, %v1578_v27  ;;  %v846_v34 = vpop.f32.mrb[33].mxu1  ;;  %v1197_v35 = vpop.f32.mrb[34].mxu0  ;;  %v901_v27 = vld [vmem:[%s1746_s3 + $0x40] sm:$0xff] }
 0x139   :  { %v879_v36 = vmax.f32 %v823_v24, 0.0  ;;  %v847_v37 = vadd.f32 %v846_v34, %v1602_v30  ;;  %v826_v38 = vadd.f32 %v1197_v35, %v1586_v45  ;;  %v1205_v39 = vpop.f32.mrb[34].mxu1  ;;  %v817_v40 = vpop.f32.mrb[35].mxu0  ;;  %v904_v45 = vld [vmem:[%s1746_s3 + $0x58] sm:$0xff] }
 0x13a   :  { %v887_v41 = vmax.f32 %v855_v31, 0.0  ;;  %v877_v42 = vmax.f32 %v815_v33, 0.0  ;;  %v858_v46 = vadd.f32 %v1205_v39, %v761_v50  ;;  %v818_v47 = vadd.f32 %v817_v40, %v1580_v29  ;;  %v849_v48 = vpop.f32.mrb[35].mxu1  ;;  %v902_v29 = vld [vmem:[%s1746_s3 + $0x48] sm:$0xff] }
 0x13b   :  { %v911_v49 = vadd.f32 %v895_v28, %v879_v36  ;;  %v885_v30 = vmax.f32 %v847_v37, 0.0  ;;  %v880_v51 = vmax.f32 %v826_v38, 0.0  ;;  %v850_v53 = vadd.f32 %v849_v48, %v1604_v32  ;;  %v908_v38 = vld [vmem:[%s1746_s3 + $0x78] sm:$0xff]  ;;  %v898_v39 = vld [vmem:[%s1746_s3 + $0x28] sm:$0xff] }
 0x13c   :  { %v919_v54 = vadd.f32 %v903_v14, %v887_v41  ;;  %v909_v55 = vadd.f32 %v893_v43, %v877_v42  ;;  %v888_v56 = vmax.f32 %v858_v46, 0.0  ;;  %v878_v50 = vmax.f32 %v818_v47, 0.0 }
 0x13d   :  { %v927_v57 = vmax.f32 %v911_v49, 0.0  ;;  %v917_v58 = vadd.f32 %v901_v27, %v885_v30  ;;  %v912_v60 = vadd.f32 %v896_v44, %v880_v51  ;;  %v886_v62 = vmax.f32 %v850_v53, 0.0  ;;  %v906_v27 = vld [vmem:[%s1746_s3 + $0x68] sm:$0xff] }
 0x13e   :  { %v935_v63 = vmax.f32 %v919_v54, 0.0  ;;  %v925_v0 = vmax.f32 %v909_v55, 0.0  ;;  %v920_v1 = vadd.f32 %v904_v45, %v888_v56  ;;  %v910_v3 = vadd.f32 %v894_v52, %v878_v50  ;;  %v1200_v5 = vpop.f32.mrb[36].mxu0 }
 0x13f   :  { %943 = vst.msk [vmem:[%s1747_s4 + $0x10] sm:$0xff] %vm561_vm0, %v927_v57  ;;  %v933_v32 = vmax.f32 %v917_v58, 0.0  ;;  %v928_v6 = vmax.f32 %v912_v60, 0.0  ;;  %v918_v7 = vadd.f32 %v902_v29, %v886_v62  ;;  %v839_v8 = vadd.f32 %v1200_v5, %v1596_v11  ;;  %v1208_v9 = vpop.f32.mrb[36].mxu1  ;;  %v830_v10 = vpop.f32.mrb[37].mxu0 }
 0x140   :  { %951 = vst.msk [vmem:[%s1747_s4 + $0x50] sm:$0xff] %vm561_vm0, %v935_v63  ;;  %941 = vst.msk [vmem:[%s1747_s4] sm:$0xff] %vm561_vm0, %v925_v0  ;;  %v936_v12 = vmax.f32 %v920_v1, 0.0  ;;  %v926_v15 = vmax.f32 %v910_v3, 0.0  ;;  %v871_v17 = vadd.f32 %v1208_v9, %v774_v21  ;;  %v831_v11 = vadd.f32 %v830_v10, %v1590_v59  ;;  %v862_v18 = vpop.f32.mrb[37].mxu1  ;;  %v1201_v19 = vpop.f32.mrb[38].mxu0 }
 0x141   :  { %949 = vst.msk [vmem:[%s1747_s4 + $0x40] sm:$0xff] %vm561_vm0, %v933_v32  ;;  %944 = vst.msk [vmem:[%s1747_s4 + $0x18] sm:$0xff] %vm561_vm0, %v928_v6  ;;  %v934_v20 = vmax.f32 %v918_v7, 0.0  ;;  %v883_v22 = vmax.f32 %v839_v8, 0.0  ;;  %v907_v21 = vld [vmem:[%s1746_s3 + $0x70] sm:$0xff]  ;;  %v897_v59 = vld [vmem:[%s1746_s3 + $0x20] sm:$0xff]  ;;  %v863_v24 = vadd.f32 %v862_v18, %v1610_v2  ;;  %v842_v25 = vadd.f32 %v1201_v19, %v1598_v13 }
 0x142   :  { %v1209_v26 = vpop.f32.mrb[38].mxu1  ;;  %v833_v28 = vpop.f32.mrb[39].mxu0  ;;  %952 = vst.msk [vmem:[%s1747_s4 + $0x58] sm:$0xff] %vm561_vm0, %v936_v12  ;;  %942 = vst.msk [vmem:[%s1747_s4 + $0x8] sm:$0xff] %vm561_vm0, %v926_v15  ;;  %v891_v31 = vmax.f32 %v871_v17, 0.0  ;;  %v881_v33 = vmax.f32 %v831_v11, 0.0 }
 0x143   :  { %v905_v2 = vld [vmem:[%s1746_s3 + $0x60] sm:$0xff]  ;;  %v900_v13 = vld [vmem:[%s1746_s3 + $0x38] sm:$0xff]  ;;  %v874_v34 = vadd.f32 %v1209_v26, %v1616_v23  ;;  %v834_v35 = vadd.f32 %v833_v28, %v1592_v61  ;;  %v865_v36 = vpop.f32.mrb[39].mxu1  ;;  %950 = vst.msk [vmem:[%s1747_s4 + $0x48] sm:$0xff] %vm561_vm0, %v934_v20  ;;  %v915_v14 = vadd.f32 %v899_v16, %v883_v22  ;;  %v889_v43 = vmax.f32 %v863_v24, 0.0 }
 0x144   :  { %v884_v37 = vmax.f32 %v842_v25, 0.0  ;;  %v866_v23 = vadd.f32 %v865_v36, %v1612_v4  ;;  %v923_v61 = vadd.f32 %v907_v21, %v891_v31  ;;  %v913_v40 = vadd.f32 %v897_v59, %v881_v33 }
 0x145   :  { %v892_v41 = vmax.f32 %v874_v34, 0.0  ;;  %v882_v42 = vmax.f32 %v834_v35, 0.0  ;;  %v931_v44 = vmax.f32 %v915_v14, 0.0  ;;  %v921_v46 = vadd.f32 %v905_v2, %v889_v43 }
 0x146   :  { %v916_v47 = vadd.f32 %v900_v13, %v884_v37  ;;  %v890_v48 = vmax.f32 %v866_v23, 0.0  ;;  %v939_v49 = vmax.f32 %v923_v61, 0.0  ;;  %v929_v30 = vmax.f32 %v913_v40, 0.0 }
 0x147   :  { %v924_v51 = vadd.f32 %v908_v38, %v892_v41  ;;  %v914_v45 = vadd.f32 %v898_v39, %v882_v42  ;;  %947 = vst.msk [vmem:[%s1747_s4 + $0x30] sm:$0xff] %vm561_vm0, %v931_v44  ;;  %v937_v4 = vmax.f32 %v921_v46, 0.0 }
 0x148   :  { %v932_v52 = vmax.f32 %v916_v47, 0.0  ;;  %v922_v53 = vadd.f32 %v906_v27, %v890_v48  ;;  %955 = vst.msk [vmem:[%s1747_s4 + $0x70] sm:$0xff] %vm561_vm0, %v939_v49  ;;  %945 = vst.msk [vmem:[%s1747_s4 + $0x20] sm:$0xff] %vm561_vm0, %v929_v30 }
 0x149   :  { %v940_v54 = vmax.f32 %v924_v51, 0.0  ;;  %v930_v55 = vmax.f32 %v914_v45, 0.0  ;;  %953 = vst.msk [vmem:[%s1747_s4 + $0x60] sm:$0xff] %vm561_vm0, %v937_v4 }
 0x14a   :  { %948 = vst.msk [vmem:[%s1747_s4 + $0x38] sm:$0xff] %vm561_vm0, %v932_v52  ;;  %v938_v56 = vmax.f32 %v922_v53, 0.0 }
 0x14b   :  { %956 = vst.msk [vmem:[%s1747_s4 + $0x78] sm:$0xff] %vm561_vm0, %v940_v54  ;;  %946 = vst.msk [vmem:[%s1747_s4 + $0x28] sm:$0xff] %vm561_vm0, %v930_v55 }
 0x14c   :  { %954 = vst.msk [vmem:[%s1747_s4 + $0x68] sm:$0xff] %vm561_vm0, %v938_v56 }

// kernel: dae_forward.19
= control target key start
LH: loop header
LB: loop body
LE: loop exit
PB: predicated region body
PF: predicated region fallthrough
CT: control target
= control target key end

     0   :  { %s2452_s17 = smov 0   ;;  %s2943_s0 = inlined_call_operand.vmem [shape: bf16[512,576], index: 0, kind: input, shape index: {}]   ;;  %s2944_s1 = inlined_call_operand.vmem [shape: bf16[576,1], index: 1, kind: input, shape index: {}]   ;;  %s2945_s2 = inlined_call_operand.<no memory space> [shape: f32[1,1], index: 2, kind: input, shape index: {}]   ;;  %s2946_s3 = inlined_call_operand.vmem [shape: f32[512,1], index: 3, kind: input, shape index: {}]   ;;  %s2947_s4 = inlined_call_operand.vmem [shape: f32[512,1], index: 4, kind: output, shape index: {}]  }
   0x1   :  { %v9_v0 = vstv %s2945_s2 }
   0x2   :  { %10 = vst [vmem:[#allocation2] sm:$0x1] %v9_v0 }
   0x3 LB: > { %s1749_s18 = sadd.s32 4294967295, %s2422_s17   ;;  %p1753_p0 = scmp.ge.s32.totalorder %s2422_s17, 1  ;;  %s2422_s17 = sphi %s2452_s17, %s16_s17  }
   0x4   : > { %p177_p1 = scmp.lt.s32.totalorder %s2422_s17, 3 }
   0x6   : > { %p178_p2 = pnand %p1753_p0, %p177_p1 }
   0x7   : > { %v2204_v1 = vld [vmem:[%s2944_s1 + $0x40] sm:$0xff] (!%p178_p2)   ;;  %s1754_s2 = sshll.u32 (!%p178_p2), %s1749_s18, 5  ;;  %v2206_v3 = vld [vmem:[%s2944_s1 + $0x48] sm:$0xff] (!%p178_p2)   ;;  %v2208_v5 = vld [vmem:[%s2944_s1 + $0x50] sm:$0xff] (!%p178_p2)   ;;  %vm1020_vm0 = vcmask (!%p178_p2), 523264   ;;  %vm1648_vm1 = vcmask (!%p178_p2), 7168  }
   0x8   : > { %181 = sbr.rel (%p178_p2) target bundleno = 429 (0x1ad), region = 36  ;;  %v2205_v2 = vld [vmem:[%s2944_s1] sm:$0xff] (!%p178_p2)   ;;  %1895 = vmatprep.subr.bf16.mxu0 (!%p178_p2), %v2204_v1  ;;  %2179 = vmatprep.subr.bf16.mxu1 (!%p178_p2), %v2204_v1  ;;  %p210_p3 = scmp.lt.s32.totalorder (!%p178_p2), %s1754_s2, 63  ;;  %v2207_v4 = vld [vmem:[%s2944_s1 + $0x8] sm:$0xff] (!%p178_p2)   ;;  %v2209_v6 = vld [vmem:[%s2944_s1 + $0x10] sm:$0xff] (!%p178_p2)  }
   0x9   : > { %1896 = vmatpush3.bf16.msra.mxu0 (!%p178_p2), %v2205_v2  ;;  %2187 = vmatpush3.bf16.msra.mxu1 (!%p178_p2), %v2205_v2  ;;  %v2210_v7 = vld [vmem:[%s2944_s1 + $0x58] sm:$0xff] (!%p178_p2)   ;;  %v2212_v9 = vld [vmem:[%s2944_s1 + $0x60] sm:$0xff] (!%p178_p2)   ;;  %v2214_v11 = vld [vmem:[%s2944_s1 + $0x68] sm:$0xff] (!%p178_p2)  }
   0xa   : > { %1897 = vmatprep.subr.bf16.mxu0 (!%p178_p2), %v2206_v3  ;;  %2180 = vmatprep.subr.bf16.mxu1 (!%p178_p2), %v2206_v3  ;;  %v2211_v8 = vld [vmem:[%s2944_s1 + $0x18] sm:$0xff] (!%p178_p2)   ;;  %v2213_v10 = vld [vmem:[%s2944_s1 + $0x20] sm:$0xff] (!%p178_p2)   ;;  %v2215_v14 = vld [vmem:[%s2944_s1 + $0x28] sm:$0xff] (!%p178_p2)  }
   0xb   : > { %v2216_v15 = vld [vmem:[%s2944_s1 + $0x70] sm:$0xff] (!%p178_p2)   ;;  %v2218_v17 = vld [vmem:[%s2944_s1 + $0x78] sm:$0xff] (!%p178_p2)   ;;  %v2226_v19 = vld [vmem:[%s2944_s1 + $0xc0] sm:$0xff] (!%p178_p2)  }
   0xc   : > { %v2217_v16 = vld [vmem:[%s2944_s1 + $0x30] sm:$0xff] (!%p178_p2)   ;;  %v2219_v18 = vld [vmem:[%s2944_s1 + $0x38] sm:$0xff] (!%p178_p2)   ;;  %v2229_v20 = vld [vmem:[%s2944_s1 + $0x100] sm:$0xff] (!%p178_p2)  }
   0xd   : > { %1898 = vmatpush3.bf16.msra.mxu0 (!%p178_p2), %v2207_v4  ;;  %2188 = vmatpush3.bf16.msra.mxu1 (!%p178_p2), %v2207_v4  ;;  %v2227_v23 = vld [vmem:[%s2944_s1 + $0x80] sm:$0xff] (!%p178_p2)   ;;  %v2228_v24 = vld [vmem:[%s2944_s1 + $0xc8] sm:$0xff] (!%p178_p2)   ;;  %v2237_v29 = vld [vmem:[%s2944_s1 + $0xd0] sm:$0xff] (!%p178_p2)  }
   0xe   : > { %1899 = vmatprep.subr.bf16.mxu0 (!%p178_p2), %v2208_v5  ;;  %2181 = vmatprep.subr.bf16.mxu1 (!%p178_p2), %v2208_v5  ;;  %v2230_v27 = vld [vmem:[%s2944_s1 + $0x88] sm:$0xff] (!%p178_p2)   ;;  %v2238_v31 = vld [vmem:[%s2944_s1 + $0x90] sm:$0xff] (!%p178_p2)   ;;  %v2239_v32 = vld [vmem:[%s2944_s1 + $0xd8] sm:$0xff] (!%p178_p2)  }
   0xf   : > { %s2949_s2 = smov (!%p210_p3, %s1754_s2), 63  ;;  %v2240_v35 = vld [vmem:[%s2944_s1 + $0x98] sm:$0xff]   ;;  %v2260_v36 = vld [vmem:[%s2944_s1 + $0x108] sm:$0xff]   ;;  %v2247_v38 = vld [vmem:[%s2944_s1 + $0xe0] sm:$0xff]  }
  0x10   : > { %s2195_s7 = smul.u32 20, %s2949_s2  ;;  %v2248_v40 = vld [vmem:[%s2944_s1 + $0xa0] sm:$0xff]   ;;  %v2249_v41 = vld [vmem:[%s2944_s1 + $0xe8] sm:$0xff]   ;;  %v2257_v47 = vld [vmem:[%s2944_s1 + $0xf0] sm:$0xff]  }
  0x11   : > { %1900 = vmatpush3.bf16.msra.mxu0 %v2209_v6  ;;  %2189 = vmatpush3.bf16.msra.mxu1 %v2209_v6  ;;  %v2250_v44 = vld [vmem:[%s2944_s1 + $0xa8] sm:$0xff]   ;;  %v2280_v48 = vld [vmem:[%s2944_s1 + $0x110] sm:$0xff]   ;;  %v2259_v50 = vld [vmem:[%s2944_s1 + $0xf8] sm:$0xff]  }
  0x12   : > { %1901 = vmatprep.subr.bf16.mxu0 %v2210_v7  ;;  %2182 = vmatprep.subr.bf16.mxu1 %v2210_v7  ;;  %s2493_s14 = scalar_lea.vmem %s2943_s0, %s2195_s7  ;;  %v2258_v49 = vld [vmem:[%s2944_s1 + $0xb0] sm:$0xff]   ;;  %v2261_v53 = vld [vmem:[%s2944_s1 + $0xb8] sm:$0xff]  }
  0x13   : > { %v2222_v12 = vld [vmem:[%s2493_s14 + $0x4] ss:$20 sps:$4 sm:$0xff]   ;;  %v2220_v21 = vld [vmem:[%s2493_s14] ss:$20 sps:$4 sm:$0xff]   ;;  %v2235_v28 = vld [vmem:[%s2493_s14 + $0x28] ss:$20 sps:$4 sm:$0xff]  }
  0x14   : > { %v2225_v13 = vld [vmem:[%s2493_s14 + $0x1e4] ss:$20 sps:$4 sm:$0xff]   ;;  %1101 = vmatprep.mubr.bf16.mxu0 %v2222_v12  ;;  %v2223_v22 = vld [vmem:[%s2493_s14 + $0x1e0] ss:$20 sps:$4 sm:$0xff]   ;;  %v2236_v30 = vld [vmem:[%s2493_s14 + $0x208] ss:$20 sps:$4 sm:$0xff]  }
  0x15   : > { %1902 = vmatpush3.bf16.msra.mxu0 %v2211_v8  ;;  %2190 = vmatpush3.bf16.msra.mxu1 %v2211_v8  ;;  %v2231_v25 = vld [vmem:[%s2493_s14 + $0x2c] ss:$20 sps:$4 sm:$0xff]   ;;  %v2241_v33 = vld [vmem:[%s2493_s14 + $0x54] ss:$20 sps:$4 sm:$0xff]   ;;  %v2245_v37 = vld [vmem:[%s2493_s14 + $0x50] ss:$20 sps:$4 sm:$0xff]  }
  0x16   : > { %1903 = vmatprep.subr.bf16.mxu0 %v2212_v9  ;;  %2183 = vmatprep.subr.bf16.mxu1 %v2212_v9  ;;  %v2233_v26 = vld [vmem:[%s2493_s14 + $0x20c] ss:$20 sps:$4 sm:$0xff]   ;;  %v2243_v34 = vld [vmem:[%s2493_s14 + $0x234] ss:$20 sps:$4 sm:$0xff]   ;;  %v2246_v39 = vld [vmem:[%s2493_s14 + $0x230] ss:$20 sps:$4 sm:$0xff]  }
  0x17   : > { %1197 = vmatprep.mubr.bf16.mxu1 %v2225_v13  ;;  %v2251_v42 = vld [vmem:[%s2493_s14 + $0x7c] ss:$20 sps:$4 sm:$0xff]   ;;  %v2255_v45 = vld [vmem:[%s2493_s14 + $0x78] ss:$20 sps:$4 sm:$0xff]   ;;  %v2267_v55 = vld [vmem:[%s2493_s14 + $0xa0] ss:$20 sps:$4 sm:$0xff]  }
  0x18   : > { %v2253_v43 = vld [vmem:[%s2493_s14 + $0x25c] ss:$20 sps:$4 sm:$0xff]   ;;  %v2256_v46 = vld [vmem:[%s2493_s14 + $0x258] ss:$20 sps:$4 sm:$0xff]   ;;  %v2270_v58 = vld [vmem:[%s2493_s14 + $0x34] ss:$20 sps:$4 sm:$0xff]  }
  0x19   : > { %1904 = vmatpush3.bf16.msra.mxu0 %v2213_v10  ;;  %2191 = vmatpush3.bf16.msra.mxu1 %v2213_v10  ;;  %v2262_v51 = vld [vmem:[%s2493_s14 + $0xa4] ss:$20 sps:$4 sm:$0xff]   ;;  %v2266_v52 = vld [vmem:[%s2493_s14 + $0xc] ss:$20 sps:$4 sm:$0xff]   ;;  %v2264_v54 = vld [vmem:[%s2493_s14 + $0x8] ss:$20 sps:$4 sm:$0xff]  }
  0x1a   : > { %1905 = vmatprep.subr.bf16.mxu0 %v2214_v11  ;;  %2184 = vmatprep.subr.bf16.mxu1 %v2214_v11  ;;  %v2268_v56 = vld [vmem:[%s2493_s14 + $0xcc] ss:$20 sps:$4 sm:$0xff]   ;;  %v2299_v57 = vld [vmem:[%s2944_s1 + $0x118] sm:$0xff]   ;;  %v2273_v60 = vld [vmem:[%s2493_s14 + $0x30] ss:$20 sps:$4 sm:$0xff]  }
  0x1b   : > { %v2272_v59 = vld [vmem:[%s2493_s14 + $0xc8] ss:$20 sps:$4 sm:$0xff]   ;;  %v2278_v63 = vld [vmem:[%s2493_s14 + $0xf0] ss:$20 sps:$4 sm:$0xff]   ;;  %v2279_v0 = vld [vmem:[%s2493_s14 + $0x58] ss:$20 sps:$4 sm:$0xff]  }
  0x1c   : > { %v2274_v61 = vld [vmem:[%s2493_s14 + $0xf4] ss:$20 sps:$4 sm:$0xff]   ;;  %v2276_v62 = vld [vmem:[%s2493_s14 + $0x5c] ss:$20 sps:$4 sm:$0xff]   ;;  %v2283_v2 = vld [vmem:[%s2493_s14 + $0x84] ss:$20 sps:$4 sm:$0xff]  }
  0x1d   : > { %1906 = vmatpush3.bf16.msra.mxu0 %v2215_v14  ;;  %2192 = vmatpush3.bf16.msra.mxu1 %v2215_v14  ;;  %v2281_v1 = vld [vmem:[%s2493_s14 + $0x11c] ss:$20 sps:$4 sm:$0xff]   ;;  %v2285_v3 = vld [vmem:[%s2493_s14 + $0x118] ss:$20 sps:$4 sm:$0xff]   ;;  %v2286_v4 = vld [vmem:[%s2493_s14 + $0x80] ss:$20 sps:$4 sm:$0xff]  }
  0x1e   : > { %1907 = vmatprep.subr.bf16.mxu0 %v2216_v15  ;;  %2185 = vmatprep.subr.bf16.mxu1 %v2216_v15  ;;  %v2287_v5 = vld [vmem:[%s2493_s14 + $0x144] ss:$20 sps:$4 sm:$0xff]   ;;  %v2289_v6 = vld [vmem:[%s2493_s14 + $0xac] ss:$20 sps:$4 sm:$0xff]   ;;  %v2292_v8 = vld [vmem:[%s2493_s14 + $0xa8] ss:$20 sps:$4 sm:$0xff]  }
  0x1f   : > { %v2291_v7 = vld [vmem:[%s2493_s14 + $0x140] ss:$20 sps:$4 sm:$0xff]   ;;  %v2297_v11 = vld [vmem:[%s2493_s14 + $0x168] ss:$20 sps:$4 sm:$0xff]   ;;  %v2298_v12 = vld [vmem:[%s2493_s14 + $0xd0] ss:$20 sps:$4 sm:$0xff]  }
  0x20   : > { %v2293_v9 = vld [vmem:[%s2493_s14 + $0x16c] ss:$20 sps:$4 sm:$0xff]   ;;  %v2295_v10 = vld [vmem:[%s2493_s14 + $0xd4] ss:$20 sps:$4 sm:$0xff]   ;;  %v2302_v14 = vld [vmem:[%s2493_s14 + $0xfc] ss:$20 sps:$4 sm:$0xff]  }
  0x21   : > { %1908 = vmatpush3.bf16.msra.mxu0 %v2217_v16  ;;  %2193 = vmatpush3.bf16.msra.mxu1 %v2217_v16  ;;  %v2300_v13 = vld [vmem:[%s2493_s14 + $0x194] ss:$20 sps:$4 sm:$0xff]   ;;  %v2304_v15 = vld [vmem:[%s2493_s14 + $0x190] ss:$20 sps:$4 sm:$0xff]   ;;  %v2305_v16 = vld [vmem:[%s2493_s14 + $0xf8] ss:$20 sps:$4 sm:$0xff]  }
  0x22   : > { %1909 = vmatprep.subr.bf16.mxu0 %v2218_v17  ;;  %2186 = vmatprep.subr.bf16.mxu1 %v2218_v17  ;;  %v2306_v17 = vld [vmem:[%s2493_s14 + $0x1bc] ss:$20 sps:$4 sm:$0xff]  }
  0x25   : > { %1910 = vmatpush3.bf16.msra.mxu0 %v2219_v18  ;;  %2194 = vmatpush3.bf16.msra.mxu1 %v2219_v18  ;;  %v2308_v18 = vld [vmem:[%s2493_s14 + $0x124] ss:$20 sps:$4 sm:$0xff]  }
  0x26   : > { %2007 = vmatprep.subr.bf16.mxu1 %v2226_v19  ;;  %2139 = vmatprep.subr.bf16.mxu0 %v2229_v20  ;;  %v2310_v19 = vld [vmem:[%s2493_s14 + $0x1b8] ss:$20 sps:$4 sm:$0xff]  }
  0x28   : > { %1102 = vmatmul.mubr.bf16.vlgmr.msra.gmra.mrb[0].mxu0 %v2220_v21  ;;  %1198 = vmatmul.mubr.bf16.vlgmr.msra.gmra.mrb[0].mxu1 %v2223_v22  ;;  %v2312_v21 = vld [vmem:[%s2493_s14 + $0x14c] ss:$20 sps:$4 sm:$0xff]   ;;  %v2314_v22 = vld [vmem:[%s2493_s14 + $0x10] ss:$20 sps:$4 sm:$0xff]  }
  0x29   : > { %2008 = vmatpush3.bf16.msra.mxu1 %v2227_v23  ;;  %2140 = vmatpush3.bf16.msra.mxu0 %v2229_v20  ;;  %v2311_v20 = vld [vmem:[%s2493_s14 + $0x120] ss:$20 sps:$4 sm:$0xff]   ;;  %v2315_v23 = vld [vmem:[%s2493_s14 + $0x148] ss:$20 sps:$4 sm:$0xff]  }
  0x2a   : > { %2009 = vmatprep.subr.bf16.mxu1 %v2228_v24  ;;  %1109 = vmatprep.mubr.bf16.mxu0 %v2231_v25  ;;  %v2316_v24 = vld [vmem:[%s2493_s14 + $0x38] ss:$20 sps:$4 sm:$0xff]   ;;  %v2317_v25 = vld [vmem:[%s2493_s14 + $0x174] ss:$20 sps:$4 sm:$0xff]  }
  0x2b   : > { %1205 = vmatprep.mubr.bf16.mxu1 %v2233_v26  ;;  %2141 = vmatprep.subr.bf16.mxu0 %v2260_v36  ;;  %v2319_v26 = vld [vmem:[%s2493_s14 + $0x60] ss:$20 sps:$4 sm:$0xff]  }
  0x2d   : > { %2010 = vmatpush3.bf16.msra.mxu1 %v2230_v27  ;;  %2142 = vmatpush3.bf16.msra.mxu0 %v2260_v36  ;;  %v2320_v27 = vld [vmem:[%s2493_s14 + $0x170] ss:$20 sps:$4 sm:$0xff]   ;;  %v2331_v36 = vld [vmem:[%s2493_s14 + $0x128] ss:$20 sps:$4 sm:$0xff]  }
  0x2e   : > { %2011 = vmatprep.subr.bf16.mxu1 %v2237_v29  ;;  %2143 = vmatprep.subr.bf16.mxu0 %v2280_v48  ;;  %v2322_v29 = vld [vmem:[%s2493_s14 + $0x19c] ss:$20 sps:$4 sm:$0xff]  }
  0x30   : > { %1110 = vmatmul.mubr.bf16.gmra.mrb[4].mxu0 %v2235_v28  ;;  %1206 = vmatmul.mubr.bf16.gmra.mrb[4].mxu1 %v2236_v30  ;;  %v2321_v28 = vld [vmem:[%s2493_s14 + $0x88] ss:$20 sps:$4 sm:$0xff]   ;;  %v2324_v30 = vld [vmem:[%s2493_s14 + $0xb0] ss:$20 sps:$4 sm:$0xff]  }
  0x31   : > { %2012 = vmatpush3.bf16.msra.mxu1 %v2238_v31  ;;  %1117 = vmatprep.mubr.bf16.mxu0 %v2241_v33  ;;  %v2325_v31 = vld [vmem:[%s2493_s14 + $0x198] ss:$20 sps:$4 sm:$0xff]  }
  0x32   : > { %2013 = vmatprep.subr.bf16.mxu1 %v2239_v32  ;;  %1213 = vmatprep.mubr.bf16.mxu1 %v2243_v34  ;;  %v2326_v32 = vld [vmem:[%s2493_s14 + $0xd8] ss:$20 sps:$4 sm:$0xff]   ;;  %v2329_v34 = vld [vmem:[%s2493_s14 + $0x100] ss:$20 sps:$4 sm:$0xff]  }
  0x33   : > { %2144 = vmatpush3.bf16.msra.mxu0 %v2280_v48  ;;  %v2327_v33 = vld [vmem:[%s2493_s14 + $0x1c4] ss:$20 sps:$4 sm:$0xff]  }
  0x34   : > { %2145 = vmatprep.subr.bf16.mxu0 %v2299_v57  ;;  %v2346_v48 = vld [vmem:[%s2493_s14 + $0x218] ss:$20 sps:$4 sm:$0xff]  }
  0x35   : > { %2014 = vmatpush3.bf16.msra.mxu1 %v2240_v35  ;;  %v2330_v35 = vld [vmem:[%s2493_s14 + $0x1c0] ss:$20 sps:$4 sm:$0xff]  }
  0x36   : > { %2015 = vmatprep.subr.bf16.mxu1 %v2247_v38  ;;  %v2334_v38 = vld [vmem:[%s2493_s14 + $0x150] ss:$20 sps:$4 sm:$0xff]  }
  0x37   : > { %2146 = vmatpush3.bf16.msra.mxu0 %v2299_v57 }
  0x38   : > { %1118 = vmatmul.mubr.bf16.gmra.mrb[8].mxu0 %v2245_v37  ;;  %1214 = vmatmul.mubr.bf16.gmra.mrb[8].mxu1 %v2246_v39  ;;  %v2332_v37 = vld [vmem:[%s2493_s14 + $0x1ec] ss:$20 sps:$4 sm:$0xff]   ;;  %v2335_v39 = vld [vmem:[%s2493_s14 + $0x1e8] ss:$20 sps:$4 sm:$0xff]  }
  0x39   : > { %2016 = vmatpush3.bf16.msra.mxu1 %v2248_v40  ;;  %1125 = vmatprep.mubr.bf16.mxu0 %v2251_v42  ;;  %v2336_v40 = vld [vmem:[%s2493_s14 + $0x178] ss:$20 sps:$4 sm:$0xff]   ;;  %v2339_v42 = vld [vmem:[%s2493_s14 + $0x1a0] ss:$20 sps:$4 sm:$0xff]  }
  0x3a   : > { %2017 = vmatprep.subr.bf16.mxu1 %v2249_v41  ;;  %1221 = vmatprep.mubr.bf16.mxu1 %v2253_v43  ;;  %v2337_v41 = vld [vmem:[%s2493_s14 + $0x214] ss:$20 sps:$4 sm:$0xff]   ;;  %v2340_v43 = vld [vmem:[%s2493_s14 + $0x210] ss:$20 sps:$4 sm:$0xff]  }
  0x3d   : > { %2018 = vmatpush3.bf16.msra.mxu1 %v2250_v44  ;;  %v2341_v44 = vld [vmem:[%s2493_s14 + $0x1c8] ss:$20 sps:$4 sm:$0xff]  }
  0x3e   : > { %2019 = vmatprep.subr.bf16.mxu1 %v2257_v47  ;;  %v2345_v47 = vld [vmem:[%s2493_s14 + $0x238] ss:$20 sps:$4 sm:$0xff]  }
  0x40   : > { %1126 = vmatmul.mubr.bf16.gmra.mrb[12].mxu0 %v2255_v45  ;;  %1222 = vmatmul.mubr.bf16.gmra.mrb[12].mxu1 %v2256_v46  ;;  %v2342_v45 = vld [vmem:[%s2493_s14 + $0x23c] ss:$20 sps:$4 sm:$0xff]  }
  0x41   : > { %2020 = vmatpush3.bf16.msra.mxu1 %v2258_v49  ;;  %1133 = vmatprep.mubr.bf16.mxu0 %v2262_v51  ;;  %v2344_v46 = vld [vmem:[%s2493_s14 + $0x1f0] ss:$20 sps:$4 sm:$0xff]   ;;  %v2350_v51 = vld [vmem:[%s2493_s14 + $0x260] ss:$20 sps:$4 sm:$0xff]  }
  0x42   : > { %2021 = vmatprep.subr.bf16.mxu1 %v2259_v50  ;;  %1262 = vmatprep.mubr.bf16.mxu1 %v2266_v52  ;;  %v2347_v49 = vld [vmem:[%s2493_s14 + $0x264] ss:$20 sps:$4 sm:$0xff]   ;;  %v2349_v50 = vld [vmem:[%s2493_s14 + $0x240] ss:$20 sps:$4 sm:$0xff]   ;;  %v2351_v52 = vld [vmem:[%s2493_s14 + $0x268] ss:$20 sps:$4 sm:$0xff]  }
  0x43   : > { %s1757_s14 = sshll.u32 %s2949_s2, 3 }
  0x44   : > { %s2761_s24 = scalar_lea.vmem %s2946_s3, %s1757_s14  ;;  %s2800_s27 = scalar_lea.vmem %s2947_s4, %s1757_s14 }
  0x45   : > { %2022 = vmatpush3.bf16.msra.mxu1 %v2261_v53 }
  0x48   : > { %1134 = vmatmul.mubr.bf16.gmra.mrb[16].mxu0 %v2267_v55  ;;  %1263 = vmatmul.mubr.bf16.vlgmr.msra.gmra.mrb[16].mxu1 %v2264_v54 }
  0x49   : > { %1141 = vmatprep.mubr.bf16.mxu0 %v2268_v56  ;;  %1270 = vmatprep.mubr.bf16.mxu1 %v2270_v58 }
  0x50   : > { %1142 = vmatmul.mubr.bf16.gmra.mrb[20].mxu0 %v2272_v59  ;;  %1271 = vmatmul.mubr.bf16.gmra.mrb[20].mxu1 %v2273_v60 }
  0x51   : > { %1149 = vmatprep.mubr.bf16.mxu0 %v2274_v61  ;;  %1278 = vmatprep.mubr.bf16.mxu1 %v2276_v62 }
  0x58   : > { %1150 = vmatmul.mubr.bf16.gmra.mrb[24].mxu0 %v2278_v63  ;;  %1279 = vmatmul.mubr.bf16.gmra.mrb[24].mxu1 %v2279_v0 }
  0x59   : > { %1157 = vmatprep.mubr.bf16.mxu0 %v2281_v1  ;;  %1286 = vmatprep.mubr.bf16.mxu1 %v2283_v2 }
  0x60   : > { %1158 = vmatmul.mubr.bf16.gmra.mrb[28].mxu0 %v2285_v3  ;;  %1287 = vmatmul.mubr.bf16.gmra.mrb[28].mxu1 %v2286_v4 }
  0x61   : > { %1165 = vmatprep.mubr.bf16.mxu0 %v2287_v5  ;;  %1294 = vmatprep.mubr.bf16.mxu1 %v2289_v6 }
  0x68   : > { %1166 = vmatmul.mubr.bf16.gmra.mrb[32].mxu0 %v2291_v7  ;;  %1295 = vmatmul.mubr.bf16.gmra.mrb[32].mxu1 %v2292_v8 }
  0x69   : > { %1173 = vmatprep.mubr.bf16.mxu0 %v2293_v9  ;;  %1302 = vmatprep.mubr.bf16.mxu1 %v2295_v10 }
  0x70   : > { %1174 = vmatmul.mubr.bf16.gmra.mrb[36].mxu0 %v2297_v11  ;;  %1303 = vmatmul.mubr.bf16.gmra.mrb[36].mxu1 %v2298_v12 }
  0x71   : > { %1181 = vmatprep.mubr.bf16.mxu0 %v2300_v13  ;;  %1310 = vmatprep.mubr.bf16.mxu1 %v2302_v14 }
  0x78   : > { %1182 = vmatmul.mubr.bf16.gmra.mrb[40].mxu0 %v2304_v15  ;;  %1311 = vmatmul.mubr.bf16.gmra.mrb[40].mxu1 %v2305_v16 }
  0x79   : > { %1189 = vmatprep.mubr.bf16.mxu0 %v2306_v17  ;;  %1318 = vmatprep.mubr.bf16.mxu1 %v2308_v18 }
  0x80   : > { %1190 = vmatmul.mubr.bf16.gmra.mrb[44].mxu0 %v2310_v19  ;;  %1319 = vmatmul.mubr.bf16.gmra.mrb[44].mxu1 %v2311_v20 }
  0x81   : > { %1326 = vmatprep.mubr.bf16.mxu1 %v2312_v21  ;;  %2147 = vmatprep.mubr.msk.bf16.mxu0 %vm1020_vm0, %v2314_v22 }
  0x88   : > { %1327 = vmatmul.mubr.bf16.gmra.mrb[48].mxu1 %v2315_v23  ;;  %2148 = vmatmul.mubr.msk.bf16.vlgmr.msra.gmra.mrb[48].mxu0 %vm1020_vm0, %v2316_v24 }
  0x89   : > { %1334 = vmatprep.mubr.bf16.mxu1 %v2317_v25  ;;  %2151 = vmatprep.mubr.msk.bf16.mxu0 %vm1020_vm0, %v2319_v26 }
  0x90   : > { %1335 = vmatmul.mubr.bf16.gmra.mrb[52].mxu1 %v2320_v27  ;;  %2152 = vmatmul.mubr.msk.bf16.gmra.mrb[52].mxu0 %vm1020_vm0, %v2321_v28 }
  0x91   : > { %1342 = vmatprep.mubr.bf16.mxu1 %v2322_v29  ;;  %2155 = vmatprep.mubr.msk.bf16.mxu0 %vm1020_vm0, %v2324_v30 }
  0x98   : > { %1343 = vmatmul.mubr.bf16.gmra.mrb[56].mxu1 %v2325_v31  ;;  %2156 = vmatmul.mubr.msk.bf16.gmra.mrb[56].mxu0 %vm1020_vm0, %v2326_v32 }
  0x99   : > { %1350 = vmatprep.mubr.bf16.mxu1 %v2327_v33  ;;  %2159 = vmatprep.mubr.msk.bf16.mxu0 %vm1020_vm0, %v2329_v34 }
  0xa0   : > { %1351 = vmatmul.mubr.bf16.gmra.mrb[60].mxu1 %v2330_v35  ;;  %2160 = vmatmul.mubr.msk.bf16.gmra.mrb[60].mxu0 %vm1020_vm0, %v2331_v36 }
  0xa1   : > { %1358 = vmatprep.mubr.bf16.mxu1 %v2332_v37  ;;  %2163 = vmatprep.mubr.msk.bf16.mxu0 %vm1020_vm0, %v2334_v38 }
  0xa8   : > { %1359 = vmatmul.mubr.bf16.gmra.mrb[64].mxu1 %v2335_v39  ;;  %2164 = vmatmul.mubr.msk.bf16.gmra.mrb[64].mxu0 %vm1020_vm0, %v2336_v40  ;;  %v2688_v39 = vld [vmem:[#allocation2] ss:$0 sm:$0xff] }
  0xa9   : > { %1366 = vmatprep.mubr.bf16.mxu1 %v2337_v41  ;;  %2167 = vmatprep.mubr.msk.bf16.mxu0 %vm1020_vm0, %v2339_v42 }
  0xb0   : > { %1367 = vmatmul.mubr.bf16.gmra.mrb[68].mxu1 %v2340_v43  ;;  %2168 = vmatmul.mubr.msk.bf16.gmra.mrb[68].mxu0 %vm1020_vm0, %v2341_v44 }
  0xb1   : > { %1374 = vmatprep.mubr.bf16.mxu1 %v2342_v45  ;;  %2171 = vmatprep.mubr.msk.bf16.mxu0 %vm1020_vm0, %v2344_v46 }
  0xb8   : > { %1375 = vmatmul.mubr.bf16.gmra.mrb[72].mxu1 %v2345_v47  ;;  %2172 = vmatmul.mubr.msk.bf16.gmra.mrb[72].mxu0 %vm1020_vm0, %v2346_v48 }
  0xb9   : > { %1382 = vmatprep.mubr.bf16.mxu1 %v2347_v49  ;;  %2175 = vmatprep.mubr.msk.bf16.mxu0 %vm1020_vm0, %v2349_v50 }
  0xc0   : > { %1383 = vmatmul.mubr.bf16.gmra.mrb[76].mxu1 %v2350_v51  ;;  %2176 = vmatmul.mubr.msk.bf16.gmra.mrb[76].mxu0 %vm1020_vm0, %v2351_v52 }
  0xfb   : > { %v1983_v53 = vpop.f32.mrb[0].mxu1  ;;  %v1911_v54 = vpop.f32.mrb[0].mxu0 }
  0xfc   : > { %v1984_v55 = vpop.f32.mrb[1].mxu1  ;;  %v1912_v56 = vpop.f32.mrb[1].mxu0 }
  0xfd   : > { %v2672_v57 = vadd.f32 %v1984_v55, %v1983_v53  ;;  %v1986_v58 = vpop.f32.mrb[2].mxu1  ;;  %v1913_v59 = vadd.f32 %v1912_v56, %v1911_v54  ;;  %v1914_v60 = vpop.f32.mrb[2].mxu0 }
  0xfe   : > { %v1987_v61 = vpop.f32.mrb[3].mxu1  ;;  %v1915_v62 = vpop.f32.mrb[3].mxu0 }
  0xff   : > { %v2674_v63 = vadd.f32 %v1987_v61, %v1986_v58  ;;  %v1916_v0 = vadd.f32 %v1915_v62, %v1914_v60  ;;  %v1104_v42 = vadd.f32 %v1913_v59, %v2688_v39 }
 0x101   : > { %v1107_v49 = vadd.f32 %v1916_v0, %v2688_v39 }
 0x103   : > { %v1989_v1 = vpop.f32.mrb[4].mxu1  ;;  %v1917_v2 = vpop.f32.mrb[4].mxu0 }
 0x104   : > { %v1990_v3 = vpop.f32.mrb[5].mxu1  ;;  %v1918_v4 = vpop.f32.mrb[5].mxu0 }
 0x105   : > { %v2676_v5 = vadd.f32 %v1990_v3, %v1989_v1  ;;  %v1992_v6 = vpop.f32.mrb[6].mxu1  ;;  %v1919_v7 = vadd.f32 %v1918_v4, %v1917_v2  ;;  %v1920_v8 = vpop.f32.mrb[6].mxu0 }
 0x106   : > { %v1993_v9 = vpop.f32.mrb[7].mxu1  ;;  %v1921_v10 = vpop.f32.mrb[7].mxu0 }
 0x107   : > { %v2678_v11 = vadd.f32 %v1993_v9, %v1992_v6  ;;  %v1922_v12 = vadd.f32 %v1921_v10, %v1920_v8  ;;  %v1112_v59 = vadd.f32 %v1919_v7, %v2688_v39 }
 0x109   : > { %v1115_v0 = vadd.f32 %v1922_v12, %v2688_v39 }
 0x10b   : > { %v1995_v13 = vpop.f32.mrb[8].mxu1  ;;  %v1923_v14 = vpop.f32.mrb[8].mxu0 }
 0x10c   : > { %v1996_v15 = vpop.f32.mrb[9].mxu1  ;;  %v1924_v16 = vpop.f32.mrb[9].mxu0 }
 0x10d   : > { %v2680_v17 = vadd.f32 %v1996_v15, %v1995_v13  ;;  %v1998_v18 = vpop.f32.mrb[10].mxu1  ;;  %v1925_v19 = vadd.f32 %v1924_v16, %v1923_v14  ;;  %v1926_v20 = vpop.f32.mrb[10].mxu0 }
 0x10e   : > { %v1999_v21 = vpop.f32.mrb[11].mxu1  ;;  %v1927_v22 = vpop.f32.mrb[11].mxu0 }
 0x10f   : > { %v2682_v23 = vadd.f32 %v1999_v21, %v1998_v18  ;;  %v1928_v24 = vadd.f32 %v1927_v22, %v1926_v20  ;;  %v1120_v7 = vadd.f32 %v1925_v19, %v2688_v39 }
 0x111   : > { %v1123_v12 = vadd.f32 %v1928_v24, %v2688_v39 }
 0x113   : > { %v2001_v25 = vpop.f32.mrb[12].mxu1  ;;  %v1929_v26 = vpop.f32.mrb[12].mxu0 }
 0x114   : > { %v2002_v27 = vpop.f32.mrb[13].mxu1  ;;  %v1930_v28 = vpop.f32.mrb[13].mxu0 }
 0x115   : > { %v2684_v29 = vadd.f32 %v2002_v27, %v2001_v25  ;;  %v2004_v30 = vpop.f32.mrb[14].mxu1  ;;  %v1931_v31 = vadd.f32 %v1930_v28, %v1929_v26  ;;  %v1932_v32 = vpop.f32.mrb[14].mxu0 }
 0x116   : > { %v2005_v33 = vpop.f32.mrb[15].mxu1  ;;  %v1933_v34 = vpop.f32.mrb[15].mxu0 }
 0x117   : > { %v2686_v35 = vadd.f32 %v2005_v33, %v2004_v30  ;;  %v1934_v36 = vadd.f32 %v1933_v34, %v1932_v32  ;;  %v1128_v19 = vadd.f32 %v1931_v31, %v2688_v39 }
 0x119   : > { %v1131_v24 = vadd.f32 %v1934_v36, %v2688_v39 }
 0x11b   : > { %v2023_v37 = vpop.f32.mrb[16].mxu1  ;;  %v1935_v38 = vpop.f32.mrb[16].mxu0 }
 0x11c   : > { %v2024_v40 = vpop.f32.mrb[17].mxu1  ;;  %v1936_v41 = vpop.f32.mrb[17].mxu0 }
 0x11d   : > { %v2025_v43 = vadd.f32 %v2024_v40, %v2023_v37  ;;  %v2026_v44 = vpop.f32.mrb[18].mxu1  ;;  %v1937_v45 = vadd.f32 %v1936_v41, %v1935_v38  ;;  %v1938_v46 = vpop.f32.mrb[18].mxu0 }
 0x11e   : > { %v2027_v47 = vpop.f32.mrb[19].mxu1  ;;  %v1939_v48 = vpop.f32.mrb[19].mxu0 }
 0x11f   : > { %v2028_v50 = vadd.f32 %v2027_v47, %v2026_v44  ;;  %v1940_v51 = vadd.f32 %v1939_v48, %v1938_v46  ;;  %v2692_v52 = vadd.f32 %v2025_v43, %v1104_v42  ;;  %v1136_v31 = vadd.f32 %v1937_v45, %v2688_v39 }
 0x121   : > { %v2694_v53 = vadd.f32 %v2028_v50, %v1107_v49 }
 0x123   : > { %v2029_v54 = vpop.f32.mrb[20].mxu1  ;;  %v1941_v55 = vpop.f32.mrb[20].mxu0 }
 0x124   : > { %v2030_v56 = vpop.f32.mrb[21].mxu1  ;;  %v1942_v58 = vpop.f32.mrb[21].mxu0 }
 0x125   : > { %v2031_v60 = vadd.f32 %v2030_v56, %v2029_v54  ;;  %v2032_v61 = vpop.f32.mrb[22].mxu1  ;;  %v1943_v62 = vadd.f32 %v1942_v58, %v1941_v55  ;;  %v1944_v1 = vpop.f32.mrb[22].mxu0 }
 0x126   : > { %v2033_v2 = vpop.f32.mrb[23].mxu1  ;;  %v1945_v3 = vpop.f32.mrb[23].mxu0 }
 0x127   : > { %v2034_v4 = vadd.f32 %v2033_v2, %v2032_v61  ;;  %v1946_v6 = vadd.f32 %v1945_v3, %v1944_v1  ;;  %v2698_v8 = vadd.f32 %v2031_v60, %v1112_v59  ;;  %v1139_v2 = vadd.f32 %v1940_v51, %v2688_v39 }
 0x129   : > { %v2700_v9 = vadd.f32 %v2034_v4, %v1115_v0 }
 0x12b   : > { %v2035_v10 = vpop.f32.mrb[24].mxu1  ;;  %v1947_v13 = vpop.f32.mrb[24].mxu0 }
 0x12c   : > { %v2036_v14 = vpop.f32.mrb[25].mxu1  ;;  %v1948_v15 = vpop.f32.mrb[25].mxu0 }
 0x12d   : > { %v2037_v16 = vadd.f32 %v2036_v14, %v2035_v10  ;;  %v2038_v18 = vpop.f32.mrb[26].mxu1  ;;  %v1949_v20 = vadd.f32 %v1948_v15, %v1947_v13  ;;  %v1950_v21 = vpop.f32.mrb[26].mxu0 }
 0x12e   : > { %v2039_v22 = vpop.f32.mrb[27].mxu1  ;;  %v1951_v25 = vpop.f32.mrb[27].mxu0 }
 0x12f   : > { %v2040_v26 = vadd.f32 %v2039_v22, %v2038_v18  ;;  %v1952_v27 = vadd.f32 %v1951_v25, %v1950_v21  ;;  %v2704_v28 = vadd.f32 %v2037_v16, %v1120_v7  ;;  %v1144_v7 = vadd.f32 %v1943_v62, %v2688_v39 }
 0x131   : > { %v2706_v30 = vadd.f32 %v2040_v26, %v1123_v12  ;;  %v1147_v12 = vadd.f32 %v1946_v6, %v2688_v39 }
 0x133   : > { %v2041_v32 = vpop.f32.mrb[28].mxu1  ;;  %v1953_v33 = vpop.f32.mrb[28].mxu0 }
 0x134   : > { %v2042_v34 = vpop.f32.mrb[29].mxu1  ;;  %v1954_v37 = vpop.f32.mrb[29].mxu0 }
 0x135   : > { %v2043_v38 = vadd.f32 %v2042_v34, %v2041_v32  ;;  %v2044_v40 = vpop.f32.mrb[30].mxu1  ;;  %v1955_v41 = vadd.f32 %v1954_v37, %v1953_v33  ;;  %v1956_v42 = vpop.f32.mrb[30].mxu0 }
 0x136   : > { %v2045_v43 = vpop.f32.mrb[31].mxu1  ;;  %v1957_v44 = vpop.f32.mrb[31].mxu0 }
 0x137   : > { %v2046_v46 = vadd.f32 %v2045_v43, %v2044_v40  ;;  %v2710_v47 = vadd.f32 %v1957_v44, %v1956_v42  ;;  %v2712_v48 = vadd.f32 %v2043_v38, %v1128_v19  ;;  %v1152_v40 = vadd.f32 %v1949_v20, %v2688_v39 }
 0x139   : > { %v2714_v49 = vadd.f32 %v2046_v46, %v1131_v24 }
 0x13b   : > { %v2047_v50 = vpop.f32.mrb[32].mxu1  ;;  %v1959_v54 = vpop.f32.mrb[32].mxu0 }
 0x13c   : > { %v2048_v55 = vpop.f32.mrb[33].mxu1  ;;  %v1960_v56 = vpop.f32.mrb[33].mxu0 }
 0x13d   : > { %v2049_v58 = vadd.f32 %v2048_v55, %v2047_v50  ;;  %v2050_v59 = vpop.f32.mrb[34].mxu1  ;;  %v2717_v60 = vadd.f32 %v1960_v56, %v1959_v54  ;;  %v1962_v61 = vpop.f32.mrb[34].mxu0  ;;  %v1155_v50 = vadd.f32 %v1952_v27, %v2688_v39 }
 0x13e   : > { %v2051_v1 = vpop.f32.mrb[35].mxu1  ;;  %v1963_v36 = vpop.f32.mrb[35].mxu0 }
 0x13f   : > { %v2052_v3 = vadd.f32 %v2051_v1, %v2050_v59  ;;  %v2720_v0 = vadd.f32 %v1963_v36, %v1962_v61  ;;  %v2722_v4 = vadd.f32 %v2049_v58, %v1136_v31  ;;  %v1160_v1 = vadd.f32 %v1955_v41, %v2688_v39 }
 0x141   : > { %v2724_v10 = vadd.f32 %v2052_v3, %v1139_v2 }
 0x143   : > { %v2053_v13 = vpop.f32.mrb[36].mxu1  ;;  %v1965_v14 = vpop.f32.mrb[36].mxu0 }
 0x144   : > { %v2054_v15 = vpop.f32.mrb[37].mxu1  ;;  %v1966_v45 = vpop.f32.mrb[37].mxu0 }
 0x145   : > { %v2055_v16 = vadd.f32 %v2054_v15, %v2053_v13  ;;  %v2056_v18 = vpop.f32.mrb[38].mxu1  ;;  %v2727_v21 = vadd.f32 %v1966_v45, %v1965_v14  ;;  %v1968_v22 = vpop.f32.mrb[38].mxu0  ;;  %v1163_v15 = vadd.f32 %v2710_v47, %v2688_v39 }
 0x146   : > { %v2057_v25 = vpop.f32.mrb[39].mxu1  ;;  %v1969_v51 = vpop.f32.mrb[39].mxu0 }
 0x147   : > { %v2058_v26 = vadd.f32 %v2057_v25, %v2056_v18  ;;  %v2730_v32 = vadd.f32 %v1969_v51, %v1968_v22  ;;  %v2732_v33 = vadd.f32 %v2055_v16, %v1144_v7  ;;  %v1554_v25 = vld [vmem:[%s2761_s24 + $0x10] sm:$0xff] }
 0x149   : > { %v2734_v34 = vadd.f32 %v2058_v26, %v1147_v12  ;;  %v1552_v26 = vld [vmem:[%s2761_s24] sm:$0xff] }
 0x14b   : > { %v2059_v37 = vpop.f32.mrb[40].mxu1  ;;  %v1971_v19 = vpop.f32.mrb[40].mxu0 }
 0x14c   : > { %v2060_v38 = vpop.f32.mrb[41].mxu1  ;;  %v1972_v62 = vpop.f32.mrb[41].mxu0 }
 0x14d   : > { %v2061_v42 = vadd.f32 %v2060_v38, %v2059_v37  ;;  %v2062_v43 = vpop.f32.mrb[42].mxu1  ;;  %v2737_v44 = vadd.f32 %v1972_v62, %v1971_v19  ;;  %v1974_v24 = vpop.f32.mrb[42].mxu0  ;;  %v1168_v37 = vadd.f32 %v2717_v60, %v2688_v39 }
 0x14e   : > { %v2063_v46 = vpop.f32.mrb[43].mxu1  ;;  %v1975_v6 = vpop.f32.mrb[43].mxu0 }
 0x14f   : > { %v2064_v54 = vadd.f32 %v2063_v46, %v2062_v43  ;;  %v2740_v55 = vadd.f32 %v1975_v6, %v1974_v24  ;;  %v2742_v56 = vadd.f32 %v2061_v42, %v1152_v40  ;;  %v1555_v42 = vld [vmem:[%s2761_s24 + $0x18] sm:$0xff]  ;;  %v1171_v43 = vadd.f32 %v2720_v0, %v2688_v39 }
 0x151   : > { %v2744_v31 = vadd.f32 %v2064_v54, %v1155_v50  ;;  %v1553_v50 = vld [vmem:[%s2761_s24 + $0x8] sm:$0xff] }
 0x153   : > { %v2065_v58 = vpop.f32.mrb[44].mxu1  ;;  %v1977_v20 = vpop.f32.mrb[44].mxu0 }
 0x154   : > { %v2066_v59 = vpop.f32.mrb[45].mxu1  ;;  %v1978_v61 = vpop.f32.mrb[45].mxu0 }
 0x155   : > { %v2067_v36 = vadd.f32 %v2066_v59, %v2065_v58  ;;  %v2068_v2 = vpop.f32.mrb[46].mxu1  ;;  %v2747_v3 = vadd.f32 %v1978_v61, %v1977_v20  ;;  %v1980_v13 = vpop.f32.mrb[46].mxu0 }
 0x156   : > { %v2069_v27 = vpop.f32.mrb[47].mxu1  ;;  %v1981_v14 = vpop.f32.mrb[47].mxu0 }
 0x157   : > { %v2070_v45 = vadd.f32 %v2069_v27, %v2068_v2  ;;  %v2752_v7 = vadd.f32 %v1981_v14, %v1980_v13  ;;  %v2754_v16 = vadd.f32 %v2067_v36, %v1160_v1  ;;  %v1558_v1 = vld [vmem:[%s2761_s24 + $0x30] sm:$0xff]  ;;  %v1176_v27 = vadd.f32 %v2727_v21, %v2688_v39 }
 0x159   : > { %v2763_v41 = vadd.f32 %v2070_v45, %v1163_v15 }
 0x15b   : > { %v2071_v18 = vpop.f32.mrb[48].mxu1  ;;  %v2149_v22 = vpop.f32.mrb[48].mxu0 }
 0x15c   : > { %v1434_v47 = vadd.f32 %v2149_v22, %v2698_v8  ;;  %v2072_v51 = vpop.f32.mrb[49].mxu1  ;;  %v1425_v12 = vpop.f32.mrb[49].mxu0  ;;  %v1559_v22 = vld [vmem:[%s2761_s24 + $0x38] sm:$0xff] }
 0x15d   : > { %v2073_v19 = vadd.f32 %v2072_v51, %v2071_v18  ;;  %v1426_v38 = vadd.f32 %v1425_v12, %v2692_v52  ;;  %v2074_v62 = vpop.f32.mrb[50].mxu1  ;;  %v2150_v40 = vpop.f32.mrb[50].mxu0 }
 0x15e   : > { %v1586_v24 = vadd.f32 %v1554_v25, %v1434_v47  ;;  %v1437_v46 = vadd.f32 %v2150_v40, %v2700_v9  ;;  %v2075_v6 = vpop.f32.mrb[51].mxu1  ;;  %v1428_v8 = vpop.f32.mrb[51].mxu0  ;;  %v1179_v25 = vadd.f32 %v2730_v32, %v2688_v39 }
 0x15f   : > { %v1584_v54 = vadd.f32 %v1552_v26, %v1426_v38  ;;  %v2076_v58 = vadd.f32 %v2075_v6, %v2074_v62  ;;  %v1429_v60 = vadd.f32 %v1428_v8, %v2694_v53  ;;  %v2777_v20 = vadd.f32 %v2073_v19, %v1168_v37  ;;  %v1556_v53 = vld [vmem:[%s2761_s24 + $0x20] sm:$0xff]  ;;  %v1557_v26 = vld [vmem:[%s2761_s24 + $0x28] sm:$0xff] }
 0x160   : > { %2352 = vtanh.f32 %v1586_v24  ;;  %v1587_v52 = vadd.f32 %v1555_v42, %v1437_v46 }
 0x161   : > { %2354 = vtanh.f32 %v1584_v54  ;;  %v1585_v59 = vadd.f32 %v1553_v50, %v1429_v60  ;;  %v2779_v0 = vadd.f32 %v2076_v58, %v1171_v43  ;;  %v1562_v43 = vld [vmem:[%s2761_s24 + $0x50] sm:$0xff]  ;;  %v1560_v50 = vld [vmem:[%s2761_s24 + $0x40] sm:$0xff]  ;;  %v1184_v58 = vadd.f32 %v2737_v44, %v2688_v39  ;;  %v1561_v44 = vld [vmem:[%s2761_s24 + $0x48] sm:$0xff] }
 0x162   : > { %2356 = vtanh.f32 %v1587_v52 }
 0x163   : > { %2358 = vtanh.f32 %v1585_v59  ;;  %v2077_v9 = vpop.f32.mrb[52].mxu1  ;;  %v2153_v61 = vpop.f32.mrb[52].mxu0 }
 0x164   : > { %v1450_v36 = vadd.f32 %v2153_v61, %v2712_v48  ;;  %v2078_v2 = vpop.f32.mrb[53].mxu1  ;;  %v1441_v13 = vpop.f32.mrb[53].mxu0  ;;  %v1563_v61 = vld [vmem:[%s2761_s24 + $0x58] sm:$0xff] }
 0x165   : > { %v2079_v14 = vadd.f32 %v2078_v2, %v2077_v9  ;;  %v1442_v15 = vadd.f32 %v1441_v13, %v2704_v28  ;;  %v2080_v45 = vpop.f32.mrb[54].mxu1  ;;  %v2154_v18 = vpop.f32.mrb[54].mxu0 }
 0x166   : > { %v1590_v47 = vadd.f32 %v1558_v1, %v1450_v36  ;;  %v1453_v51 = vadd.f32 %v2154_v18, %v2714_v49  ;;  %v2081_v48 = vpop.f32.mrb[55].mxu1  ;;  %v1444_v12 = vpop.f32.mrb[55].mxu0  ;;  %v1187_v1 = vadd.f32 %v2740_v55, %v2688_v39 }
 0x167   : > { %v1588_v37 = vadd.f32 %v1556_v53, %v1442_v15  ;;  %v2082_v19 = vadd.f32 %v2081_v48, %v2080_v45  ;;  %v1445_v21 = vadd.f32 %v1444_v12, %v2706_v30  ;;  %v2793_v38 = vadd.f32 %v2079_v14, %v1176_v27 }
 0x168   : > { %2360 = vtanh.f32 %v1590_v47  ;;  %v1591_v28 = vadd.f32 %v1559_v22, %v1453_v51 }
 0x169   : > { %2362 = vtanh.f32 %v1588_v37  ;;  %v1589_v49 = vadd.f32 %v1557_v26, %v1445_v21  ;;  %v2802_v32 = vadd.f32 %v2082_v19, %v1179_v25  ;;  %v1566_v25 = vld [vmem:[%s2761_s24 + $0x70] sm:$0xff]  ;;  %v1564_v26 = vld [vmem:[%s2761_s24 + $0x60] sm:$0xff]  ;;  %v1192_v19 = vadd.f32 %v2747_v3, %v2688_v39  ;;  %v1565_v3 = vld [vmem:[%s2761_s24 + $0x68] sm:$0xff] }
 0x16a   : > { %v2353_v30 = vpop.eup %2352  ;;  %2364 = vtanh.f32 %v1591_v28 }
 0x16b   : > { %v2355_v62 = vpop.eup %2354  ;;  %1651 = vst.msk [vmem:[%s2800_s27 + $0x10] sm:$0xff] %vm1648_vm1, %v2353_v30  ;;  %2366 = vtanh.f32 %v1589_v49  ;;  %v2083_v40 = vpop.f32.mrb[56].mxu1 }
 0x16c   : > { %v2157_v42 = vpop.f32.mrb[56].mxu0  ;;  %v2357_v24 = vpop.eup %2356  ;;  %1649 = vst.msk [vmem:[%s2800_s27] sm:$0xff] %vm1648_vm1, %v2355_v62  ;;  %v1567_v62 = vld [vmem:[%s2761_s24 + $0x78] sm:$0xff] }
 0x16d   : > { %v1466_v46 = vadd.f32 %v2157_v42, %v2732_v33  ;;  %v2084_v6 = vpop.f32.mrb[57].mxu1  ;;  %v1457_v8 = vpop.f32.mrb[57].mxu0  ;;  %1652 = vst.msk [vmem:[%s2800_s27 + $0x18] sm:$0xff] %vm1648_vm1, %v2357_v24 }
 0x16e   : > { %v2359_v54 = vpop.eup %2358  ;;  %v2085_v60 = vadd.f32 %v2084_v6, %v2083_v40  ;;  %v1458_v52 = vadd.f32 %v1457_v8, %v2722_v4  ;;  %v2086_v59 = vpop.f32.mrb[58].mxu1  ;;  %v1195_v40 = vadd.f32 %v2752_v7, %v2688_v39 }
 0x16f   : > { %v2158_v9 = vpop.f32.mrb[58].mxu0  ;;  %1650 = vst.msk [vmem:[%s2800_s27 + $0x8] sm:$0xff] %vm1648_vm1, %v2359_v54  ;;  %v1594_v33 = vadd.f32 %v1562_v43, %v1466_v46  ;;  %v2087_v2 = vpop.f32.mrb[59].mxu1 }
 0x170   : > { %v1469_v36 = vadd.f32 %v2158_v9, %v2734_v34  ;;  %v1460_v13 = vpop.f32.mrb[59].mxu0  ;;  %v1592_v53 = vadd.f32 %v1560_v50, %v1458_v52  ;;  %v2088_v27 = vadd.f32 %v2087_v2, %v2086_v59  ;;  %v2824_v14 = vadd.f32 %v2085_v60, %v1184_v58 }
 0x171   : > { %v1461_v4 = vadd.f32 %v1460_v13, %v2724_v10  ;;  %2368 = vtanh.f32 %v1594_v33  ;;  %v1568_v33 = vld [vmem:[%s2761_s24 + $0x80] sm:$0xff]  ;;  %v1200_v2 = vadd.f32 %v2672_v57, %v2688_v39  ;;  %v1569_v57 = vld [vmem:[%s2761_s24 + $0x88] sm:$0xff] }
 0x172   : > { %v1595_v15 = vadd.f32 %v1563_v61, %v1469_v36  ;;  %2370 = vtanh.f32 %v1592_v53  ;;  %v2826_v45 = vadd.f32 %v2088_v27, %v1187_v1  ;;  %v2361_v34 = vpop.eup %2360 }
 0x173   : > { %v1593_v55 = vadd.f32 %v1561_v44, %v1461_v4  ;;  %v2363_v18 = vpop.eup %2362  ;;  %1655 = vst.msk [vmem:[%s2800_s27 + $0x30] sm:$0xff] %vm1648_vm1, %v2361_v34  ;;  %v2089_v22 = vpop.f32.mrb[60].mxu1  ;;  %v1571_v4 = vld [vmem:[%s2761_s24 + $0x98] sm:$0xff] }
 0x174   : > { %2372 = vtanh.f32 %v1595_v15  ;;  %v2161_v10 = vpop.f32.mrb[60].mxu0  ;;  %v2365_v47 = vpop.eup %2364  ;;  %1653 = vst.msk [vmem:[%s2800_s27 + $0x20] sm:$0xff] %vm1648_vm1, %v2363_v18  ;;  %v1203_v15 = vadd.f32 %v2674_v63, %v2688_v39 }
 0x175   : > { %2374 = vtanh.f32 %v1593_v55  ;;  %v1482_v51 = vadd.f32 %v2161_v10, %v2754_v16  ;;  %v2090_v48 = vpop.f32.mrb[61].mxu1  ;;  %v1473_v12 = vpop.f32.mrb[61].mxu0  ;;  %1656 = vst.msk [vmem:[%s2800_s27 + $0x38] sm:$0xff] %vm1648_vm1, %v2365_v47 }
 0x176   : > { %v2367_v37 = vpop.eup %2366  ;;  %v2091_v21 = vadd.f32 %v2090_v48, %v2089_v22  ;;  %v1474_v28 = vadd.f32 %v1473_v12, %v2742_v56  ;;  %v2092_v49 = vpop.f32.mrb[62].mxu1 }
 0x177   : > { %v2162_v30 = vpop.f32.mrb[62].mxu0  ;;  %1654 = vst.msk [vmem:[%s2800_s27 + $0x28] sm:$0xff] %vm1648_vm1, %v2367_v37  ;;  %v1598_v16 = vadd.f32 %v1566_v25, %v1482_v51  ;;  %v2093_v43 = vpop.f32.mrb[63].mxu1 }
 0x178   : > { %v1485_v42 = vadd.f32 %v2162_v30, %v2763_v41  ;;  %v1476_v24 = vpop.f32.mrb[63].mxu0  ;;  %v1596_v46 = vadd.f32 %v1564_v26, %v1474_v28  ;;  %v2094_v6 = vadd.f32 %v2093_v43, %v2092_v49  ;;  %v1353_v8 = vadd.f32 %v2091_v21, %v1192_v19  ;;  %v1572_v49 = vld [vmem:[%s2761_s24 + $0xa0] sm:$0xff] }
 0x179   : > { %v1477_v56 = vadd.f32 %v1476_v24, %v2744_v31  ;;  %2376 = vtanh.f32 %v1598_v16  ;;  %v1570_v31 = vld [vmem:[%s2761_s24 + $0x90] sm:$0xff]  ;;  %v1575_v24 = vld [vmem:[%s2761_s24 + $0xb8] sm:$0xff] }
 0x17a   : > { %v1599_v50 = vadd.f32 %v1567_v62, %v1485_v42  ;;  %2378 = vtanh.f32 %v1596_v46  ;;  %v2848_v54 = vadd.f32 %v2094_v6, %v1195_v40  ;;  %v1208_v62 = vadd.f32 %v2676_v5, %v2688_v39  ;;  %v1573_v5 = vld [vmem:[%s2761_s24 + $0xa8] sm:$0xff] }
 0x17b   : > { %v1597_v7 = vadd.f32 %v1565_v3, %v1477_v56  ;;  %v2369_v58 = vpop.eup %2368  ;;  %v2095_v60 = vpop.f32.mrb[64].mxu1  ;;  %v1211_v3 = vadd.f32 %v2678_v11, %v2688_v39 }
 0x17c   : > { %2380 = vtanh.f32 %v1599_v50  ;;  %v2371_v41 = vpop.eup %2370  ;;  %1659 = vst.msk [vmem:[%s2800_s27 + $0x50] sm:$0xff] %vm1648_vm1, %v2369_v58  ;;  %v2165_v52 = vpop.f32.mrb[64].mxu0 }
 0x17d   : > { %2382 = vtanh.f32 %v1597_v7  ;;  %1657 = vst.msk [vmem:[%s2800_s27 + $0x40] sm:$0xff] %vm1648_vm1, %v2371_v41  ;;  %v1498_v9 = vadd.f32 %v2165_v52, %v2793_v38  ;;  %v2096_v61 = vpop.f32.mrb[65].mxu1  ;;  %v1489_v1 = vpop.f32.mrb[65].mxu0 }
 0x17e   : > { %v2373_v59 = vpop.eup %2372  ;;  %v2097_v13 = vadd.f32 %v2096_v61, %v2095_v60  ;;  %v1490_v44 = vadd.f32 %v1489_v1, %v2777_v20  ;;  %v2098_v53 = vpop.f32.mrb[66].mxu1 }
 0x17f   : > { %v2375_v36 = vpop.eup %2374  ;;  %1660 = vst.msk [vmem:[%s2800_s27 + $0x58] sm:$0xff] %vm1648_vm1, %v2373_v59  ;;  %v2166_v27 = vpop.f32.mrb[66].mxu0  ;;  %v1602_v38 = vadd.f32 %v1570_v31, %v1498_v9  ;;  %v1578_v9 = vld [vmem:[%s2761_s24 + $0xd0] sm:$0xff] }
 0x180   : > { %1658 = vst.msk [vmem:[%s2800_s27 + $0x48] sm:$0xff] %vm1648_vm1, %v2375_v36  ;;  %v1501_v55 = vadd.f32 %v2166_v27, %v2802_v32  ;;  %v2099_v34 = vpop.f32.mrb[67].mxu1  ;;  %v1492_v18 = vpop.f32.mrb[67].mxu0  ;;  %v1600_v22 = vadd.f32 %v1568_v33, %v1490_v44  ;;  %v1361_v25 = vadd.f32 %v2097_v13, %v1200_v2  ;;  %v1576_v36 = vld [vmem:[%s2761_s24 + $0xc0] sm:$0xff]  ;;  %v1216_v13 = vadd.f32 %v2680_v17, %v2688_v39 }
 0x181   : > { %v2100_v10 = vadd.f32 %v2099_v34, %v2098_v53  ;;  %v1493_v20 = vadd.f32 %v1492_v18, %v2779_v0  ;;  %2384 = vtanh.f32 %v1602_v38  ;;  %v1574_v0 = vld [vmem:[%s2761_s24 + $0xb0] sm:$0xff]  ;;  %v1219_v38 = vadd.f32 %v2682_v23, %v2688_v39 }
 0x182   : > { %v1603_v47 = vadd.f32 %v1571_v4, %v1501_v55  ;;  %2386 = vtanh.f32 %v1600_v22  ;;  %v1577_v22 = vld [vmem:[%s2761_s24 + $0xc8] sm:$0xff] }
 0x183   : > { %v1601_v63 = vadd.f32 %v1569_v57, %v1493_v20  ;;  %v2870_v51 = vadd.f32 %v2100_v10, %v1203_v15  ;;  %v2377_v48 = vpop.eup %2376  ;;  %v2101_v12 = vpop.f32.mrb[68].mxu1  ;;  %v1579_v15 = vld [vmem:[%s2761_s24 + $0xd8] sm:$0xff] }
 0x184   : > { %2388 = vtanh.f32 %v1603_v47  ;;  %v2379_v32 = vpop.eup %2378  ;;  %1663 = vst.msk [vmem:[%s2800_s27 + $0x70] sm:$0xff] %vm1648_vm1, %v2377_v48  ;;  %v2169_v26 = vpop.f32.mrb[68].mxu0 }
 0x185   : > { %2390 = vtanh.f32 %v1601_v63  ;;  %1661 = vst.msk [vmem:[%s2800_s27 + $0x60] sm:$0xff] %vm1648_vm1, %v2379_v32  ;;  %v1514_v19 = vadd.f32 %v2169_v26, %v1353_v8  ;;  %v2102_v21 = vpop.f32.mrb[69].mxu1  ;;  %v1505_v28 = vpop.f32.mrb[69].mxu0 }
 0x186   : > { %v2381_v37 = vpop.eup %2380  ;;  %v2103_v40 = vadd.f32 %v2102_v21, %v2101_v12  ;;  %v1506_v16 = vadd.f32 %v1505_v28, %v2824_v14  ;;  %v2104_v42 = vpop.f32.mrb[70].mxu1  ;;  %v1224_v28 = vadd.f32 %v2684_v29, %v2688_v39 }
 0x187   : > { %v2383_v30 = vpop.eup %2382  ;;  %1664 = vst.msk [vmem:[%s2800_s27 + $0x78] sm:$0xff] %vm1648_vm1, %v2381_v37  ;;  %v2170_v43 = vpop.f32.mrb[70].mxu0  ;;  %v1606_v46 = vadd.f32 %v1574_v0, %v1514_v19  ;;  %v1580_v19 = vld [vmem:[%s2761_s24 + $0xe0] sm:$0xff] }
 0x188   : > { %1662 = vst.msk [vmem:[%s2800_s27 + $0x68] sm:$0xff] %vm1648_vm1, %v2383_v30  ;;  %v1517_v6 = vadd.f32 %v2170_v43, %v2848_v54  ;;  %v2105_v56 = vpop.f32.mrb[71].mxu1  ;;  %v1508_v8 = vpop.f32.mrb[71].mxu0  ;;  %v1604_v50 = vadd.f32 %v1572_v49, %v1506_v16  ;;  %v1369_v58 = vadd.f32 %v2103_v40, %v1208_v62  ;;  %v1227_v16 = vadd.f32 %v2686_v35, %v2688_v39  ;;  %v1583_v35 = vld [vmem:[%s2761_s24 + $0xf8] sm:$0xff] }
 0x189   : > { %v2106_v7 = vadd.f32 %v2105_v56, %v2104_v42  ;;  %v1509_v14 = vadd.f32 %v1508_v8, %v2826_v45  ;;  %2392 = vtanh.f32 %v1606_v46  ;;  %v1582_v56 = vld [vmem:[%s2761_s24 + $0xf0] sm:$0xff] }
 0x18a   : > { %v1607_v41 = vadd.f32 %v1575_v24, %v1517_v6  ;;  %2394 = vtanh.f32 %v1604_v50  ;;  %v1581_v24 = vld [vmem:[%s2761_s24 + $0xe8] sm:$0xff] }
 0x18b   : > { %v1605_v11 = vadd.f32 %v1573_v5, %v1509_v14  ;;  %v1372_v60 = vadd.f32 %v2106_v7, %v1211_v3  ;;  %v2385_v52 = vpop.eup %2384  ;;  %v2107_v31 = vpop.f32.mrb[72].mxu1 }
 0x18c   : > { %2396 = vtanh.f32 %v1607_v41  ;;  %v2387_v54 = vpop.eup %2386  ;;  %1667 = vst.msk [vmem:[%s2800_s27 + $0x90] sm:$0xff] %vm1648_vm1, %v2385_v52  ;;  %v2173_v59 = vpop.f32.mrb[72].mxu0 }
 0x18d   : > { %2398 = vtanh.f32 %v1605_v11  ;;  %1665 = vst.msk [vmem:[%s2800_s27 + $0x80] sm:$0xff] %vm1648_vm1, %v2387_v54  ;;  %v1530_v61 = vadd.f32 %v2173_v59, %v1369_v58  ;;  %v2108_v1 = vpop.f32.mrb[73].mxu1  ;;  %v1521_v33 = vpop.f32.mrb[73].mxu0 }
 0x18e   : > { %v2389_v45 = vpop.eup %2388  ;;  %v2109_v44 = vadd.f32 %v2108_v1, %v2107_v31  ;;  %v1522_v53 = vadd.f32 %v1521_v33, %v1361_v25  ;;  %v2110_v27 = vpop.f32.mrb[74].mxu1 }
 0x18f   : > { %v2391_v2 = vpop.eup %2390  ;;  %1668 = vst.msk [vmem:[%s2800_s27 + $0x98] sm:$0xff] %vm1648_vm1, %v2389_v45  ;;  %v2174_v4 = vpop.f32.mrb[74].mxu0  ;;  %v1610_v55 = vadd.f32 %v1578_v9, %v1530_v61 }
 0x190   : > { %1666 = vst.msk [vmem:[%s2800_s27 + $0x88] sm:$0xff] %vm1648_vm1, %v2391_v2  ;;  %v1533_v34 = vadd.f32 %v2174_v4, %v1372_v60  ;;  %v2111_v18 = vpop.f32.mrb[75].mxu1  ;;  %v1524_v57 = vpop.f32.mrb[75].mxu0  ;;  %v1608_v10 = vadd.f32 %v1576_v36, %v1522_v53  ;;  %v1377_v25 = vadd.f32 %v2109_v44, %v1216_v13 }
 0x191   : > { %v2112_v17 = vadd.f32 %v2111_v18, %v2110_v27  ;;  %v1525_v20 = vadd.f32 %v1524_v57, %v2870_v51  ;;  %2400 = vtanh.f32 %v1610_v55 }
 0x192   : > { %v1611_v47 = vadd.f32 %v1579_v15, %v1533_v34  ;;  %2402 = vtanh.f32 %v1608_v10 }
 0x193   : > { %v1609_v63 = vadd.f32 %v1577_v22, %v1525_v20  ;;  %v1380_v23 = vadd.f32 %v2112_v17, %v1219_v38  ;;  %v2393_v48 = vpop.eup %2392  ;;  %v2113_v12 = vpop.f32.mrb[76].mxu1 }
 0x194   : > { %2404 = vtanh.f32 %v1611_v47  ;;  %v2395_v32 = vpop.eup %2394  ;;  %1671 = vst.msk [vmem:[%s2800_s27 + $0xb0] sm:$0xff] %vm1648_vm1, %v2393_v48  ;;  %v2177_v26 = vpop.f32.mrb[76].mxu0 }
 0x195   : > { %2406 = vtanh.f32 %v1609_v63  ;;  %1669 = vst.msk [vmem:[%s2800_s27 + $0xa0] sm:$0xff] %vm1648_vm1, %v2395_v32  ;;  %v2114_v51 = vpop.f32.mrb[77].mxu1  ;;  %v1537_v37 = vpop.f32.mrb[77].mxu0 }
 0x196   : > { %v2397_v0 = vpop.eup %2396  ;;  %v2115_v49 = vadd.f32 %v2114_v51, %v2113_v12  ;;  %v1538_v30 = vadd.f32 %v1537_v37, %v1377_v25  ;;  %v2116_v62 = vpop.f32.mrb[78].mxu1 }
 0x197   : > { %v2399_v21 = vpop.eup %2398  ;;  %1672 = vst.msk [vmem:[%s2800_s27 + $0xb8] sm:$0xff] %vm1648_vm1, %v2397_v0  ;;  %v2178_v40 = vpop.f32.mrb[78].mxu0 }
 0x198   : > { %1670 = vst.msk [vmem:[%s2800_s27 + $0xa8] sm:$0xff] %vm1648_vm1, %v2399_v21  ;;  %v2117_v42 = vpop.f32.mrb[79].mxu1  ;;  %v1540_v43 = vpop.f32.mrb[79].mxu0  ;;  %v1385_v3 = vadd.f32 %v2115_v49, %v1224_v28  ;;  %v1612_v46 = vadd.f32 %v1580_v19, %v1538_v30 }
 0x199   : > { %v2118_v29 = vadd.f32 %v2117_v42, %v2116_v62  ;;  %v1541_v6 = vadd.f32 %v1540_v43, %v1380_v23 }
 0x19a   : > { %v1546_v8 = vadd.f32 %v2177_v26, %v1385_v3  ;;  %2408 = vtanh.f32 %v1612_v46 }
 0x19b   : > { %v1388_v5 = vadd.f32 %v2118_v29, %v1227_v16  ;;  %v1613_v50 = vadd.f32 %v1581_v24, %v1541_v6  ;;  %v2401_v7 = vpop.eup %2400 }
 0x19c   : > { %v2403_v39 = vpop.eup %2402  ;;  %1675 = vst.msk [vmem:[%s2800_s27 + $0xd0] sm:$0xff] %vm1648_vm1, %v2401_v7  ;;  %v1614_v14 = vadd.f32 %v1582_v56, %v1546_v8 }
 0x19d   : > { %v1549_v58 = vadd.f32 %v2178_v40, %v1388_v5  ;;  %2410 = vtanh.f32 %v1613_v50  ;;  %1673 = vst.msk [vmem:[%s2800_s27 + $0xc0] sm:$0xff] %vm1648_vm1, %v2403_v39 }
 0x19e   : > { %v2405_v41 = vpop.eup %2404  ;;  %2412 = vtanh.f32 %v1614_v14 }
 0x19f   : > { %v2407_v11 = vpop.eup %2406  ;;  %1676 = vst.msk [vmem:[%s2800_s27 + $0xd8] sm:$0xff] %vm1648_vm1, %v2405_v41  ;;  %v1615_v60 = vadd.f32 %v1583_v35, %v1549_v58 }
 0x1a0   : > { %1674 = vst.msk [vmem:[%s2800_s27 + $0xc8] sm:$0xff] %vm1648_vm1, %v2407_v11 }
 0x1a1   : > { %2414 = vtanh.f32 %v1615_v60 }
 0x1a4   : > { %v2409_v52 = vpop.eup %2408 }
 0x1a5   : > { %1677 = vst.msk [vmem:[%s2800_s27 + $0xe0] sm:$0xff] %vm1648_vm1, %v2409_v52 }
 0x1a7   : > { %v2411_v54 = vpop.eup %2410 }
 0x1a8   : > { %1678 = vst.msk [vmem:[%s2800_s27 + $0xe8] sm:$0xff] %vm1648_vm1, %v2411_v54  ;;  %v2413_v31 = vpop.eup %2412 }
 0x1a9   : > { %1679 = vst.msk [vmem:[%s2800_s27 + $0xf0] sm:$0xff] %vm1648_vm1, %v2413_v31 }
 0x1ab   : > { %v2415_v59 = vpop.eup %2414 }
 0x1ac   : > { %1680 = vst.msk [vmem:[%s2800_s27 + $0xf8] sm:$0xff] %vm1648_vm1, %v2415_v59 }
 0x1ad PF: > { %s16_s17 = sadd.s32 1, %s2422_s17  }
 0x1ae   : > { %p13_p4 = scmp.ge.s32.totalorder %s16_s17, 4  }
 0x1b0   :  { %15 = sbr.rel (!%p13_p4) target bundleno = 3 (0x3), region = 69 }

</bundles_post_ra>
